<compile_context>
chip_gen: v6e
topology: v6e:2x2x1
jax: 0.10.0
libtpu: 0.0.40
codegen_flags: <defaults>
</compile_context>

<pallas_src>
import functools
import math

import jax
import jax.numpy as jnp
import jax.scipy.special as jss
from jax.experimental import pallas as pl
from jax.experimental.pallas import tpu as pltpu

_SQRT2 = math.sqrt(2.0)


# ----------------------------------------------------------------------------
# generation detection (cached) and small helpers
# ----------------------------------------------------------------------------
_VMEM_LIMIT_CACHE = []
_V5_CACHE = []


def _vmem_limit():
    """~75% of detected VMEM capacity (fallback: 64 MiB), clamped to sane range."""
    if not _VMEM_LIMIT_CACHE:
        try:
            cap = int(pltpu.get_tpu_info().vmem_capacity_bytes)
            lim = int(cap * 0.75)
        except Exception:
            lim = 64 * 1024 * 1024
        lim = max(32 * 1024 * 1024, min(lim, 100 * 1024 * 1024))
        _VMEM_LIMIT_CACHE.append(lim)
    return _VMEM_LIMIT_CACHE[0]


def _is_v5():
    if not _V5_CACHE:
        try:
            kind = jax.devices()[0].device_kind.lower()
        except Exception:
            kind = ""
        _V5_CACHE.append(("v5" in kind) or ("v4" in kind) or ("v3" in kind))
    return _V5_CACHE[0]


def _lowp_softmax(cdt):
    # bf16 exp / normalize only where the EUP/VPU are bf16-capable (v6e/v7x).
    return jnp.dtype(cdt) == jnp.dtype(jnp.bfloat16) and not _is_v5()


def _round_up(n, m):
    return ((n + m - 1) // m) * m


def _pick_tile(n, preferred=(512, 256, 128, 64, 32, 16, 8)):
    for t in preferred:
        if t <= n and n % t == 0:
            return t
    return n


def _pick_q_tile(n, b):
    t = _pick_tile(n)
    # v7x has 2 TensorCores sharing the "parallel" grid axes: guarantee >= 2 slots.
    if b * (n // t) < 2:
        for cand in (256, 128, 64, 32, 16, 8):
            if cand < t and n % cand == 0:
                return cand
    return t


def _pick_ff_k_tile(f):
    for t in (512, 256, 128):
        if f > t and f % t == 0:
            return t
    return f


def _spec(shape, index_map, buffers=None):
    if buffers is not None and hasattr(pl, "Buffered"):
        try:
            return pl.BlockSpec(shape, index_map, pipeline_mode=pl.Buffered(buffers))
        except TypeError:  # older BlockSpec without pipeline_mode
            pass
    return pl.BlockSpec(shape, index_map)


def _const_spec(shape):
    # Block index never changes -> single-buffer (halves weight VMEM footprint).
    n = len(shape)
    return _spec(shape, lambda *_, _n=n: (0,) * _n, buffers=1)


def _cparams(dimension_semantics):
    return pltpu.CompilerParams(dimension_semantics=dimension_semantics,
                                vmem_limit_bytes=_vmem_limit())


def _pad_tokens(a, target):
    m = a.shape[1]
    if m == target:
        return a
    pad = jnp.zeros((a.shape[0], target - m, a.shape[2]), a.dtype)
    return jnp.concatenate([a, pad], axis=1)


# ----------------------------------------------------------------------------
# shared math (usable inside kernels and in the pure-JAX reference)
# ----------------------------------------------------------------------------
def _layernorm(x, gamma, beta, eps=1e-5):
    x = x.astype(jnp.float32)
    mean = jnp.mean(x, axis=-1, keepdims=True)
    var = jnp.mean(jnp.square(x - mean), axis=-1, keepdims=True)
    return ((x - mean) * jax.lax.rsqrt(var + eps) * gamma.astype(jnp.float32)
            + beta.astype(jnp.float32))


def _erf_approx(x):
    # Abramowitz & Stegun 7.1.26, max abs error ~1.5e-7 (f32 inputs).
    a1, a2, a3, a4, a5 = 0.254829592, -0.284496736, 1.421413741, -1.453152027, 1.061405429
    pp = 0.3275911
    ax = jnp.abs(x)
    t = 1.0 / (1.0 + pp * ax)
    poly = ((((a5 * t + a4) * t + a3) * t + a2) * t + a1) * t
    erf_ax = 1.0 - poly * jnp.exp(-(ax * ax))
    return jnp.where(x >= 0, erf_ax, -erf_ax)


def _gelu(x):
    # exact (erf) GELU, matching torch.nn.functional.gelu default numerics
    return 0.5 * x * (1.0 + _erf_approx(x * (1.0 / _SQRT2)))


# ----------------------------------------------------------------------------
# Kernel A: per-batch K/V projection (optionally LayerNorm-ed context).
#           Grid = (batch, context-token tiles). Runs ONCE per forward.
# ----------------------------------------------------------------------------
def _kv_kernel(*refs, norm_ctx):
    if norm_ctx:
        c_ref, g_ref, b_ref, wk_ref, wv_ref, k_ref, v_ref = refs
    else:
        c_ref, wk_ref, wv_ref, k_ref, v_ref = refs

    cdt = wk_ref.dtype
    c = c_ref[0]                                    # (tm, Cd)
    if norm_ctx:
        c = _layernorm(c, g_ref[...], b_ref[...]).astype(cdt)
    else:
        c = c.astype(cdt)
    k_ref[0] = jnp.dot(c, wk_ref[...], preferred_element_type=jnp.float32).astype(k_ref.dtype)
    v_ref[0] = jnp.dot(c, wv_ref[...], preferred_element_type=jnp.float32).astype(v_ref.dtype)


def _project_kv(ctx, p, *, inner, norm_ctx):
    B, M, Cd = ctx.shape
    cdt = p["wk"].dtype
    tm = _pick_tile(M)
    nm = M // tm

    in_specs = [pl.BlockSpec((1, tm, Cd), lambda b, j: (b, j, 0))]
    args = [ctx]
    if norm_ctx:
        in_specs += [_const_spec((1, Cd)), _const_spec((1, Cd))]
        args += [p["ln_g"], p["ln_b"]]
    in_specs += [_const_spec((Cd, inner)), _const_spec((Cd, inner))]
    args += [p["wk"], p["wv"]]

    return pl.pallas_call(
        functools.partial(_kv_kernel, norm_ctx=norm_ctx),
        out_shape=(jax.ShapeDtypeStruct((B, M, inner), cdt),
                   jax.ShapeDtypeStruct((B, M, inner), cdt)),
        grid=(B, nm),
        in_specs=in_specs,
        out_specs=(pl.BlockSpec((1, tm, inner), lambda b, j: (b, j, 0)),
                   pl.BlockSpec((1, tm, inner), lambda b, j: (b, j, 0))),
        compiler_params=_cparams(("parallel", "parallel")),
    )(*args)


# ----------------------------------------------------------------------------
# Kernel B: fused  LayerNorm -> Q proj -> per-head softmax(QK^T)V -> out proj
#           -> residual add.  fused_kv=True additionally projects K/V from the
#           (single-tile) normalized queries (self-attention, nq == 1).
# ----------------------------------------------------------------------------
def _attn_kernel(*refs, heads, d_head, scale, m_valid, m_pad, lowp, fused_kv):
    if fused_kv:
        (x_ref, g_ref, b_ref, wq_ref, wk_ref, wv_ref, wo_ref, bo_ref,
         o_ref, o_scr) = refs
    else:
        (x_ref, k_ref, v_ref, g_ref, b_ref, wq_ref, wo_ref, bo_ref,
         o_ref, o_scr) = refs

    cdt = wq_ref.dtype                                # compute dtype
    x = x_ref[0]                                      # (tq, dim)
    xn = _layernorm(x, g_ref[...], b_ref[...]).astype(cdt)
    q = jnp.dot(xn, wq_ref[...], preferred_element_type=jnp.float32).astype(cdt)
    if fused_kv:
        k = jnp.dot(xn, wk_ref[...], preferred_element_type=jnp.float32).astype(cdt)
        v = jnp.dot(xn, wv_ref[...], preferred_element_type=jnp.float32).astype(cdt)
    else:
        k = k_ref[0]                                  # (M_pad, inner)
        v = v_ref[0]

    pad_mask = None
    if m_valid < m_pad:                               # static -> compiled in
        pad_mask = jax.lax.broadcasted_iota(jnp.int32, (1, m_pad), 1) >= m_valid

    for h in range(heads):                            # static unroll over heads
        sl = slice(h * d_head, (h + 1) * d_head)
        qh, kh, vh = q[:, sl], k[:, sl], v[:, sl]
        sim = jax.lax.dot_general(qh, kh, (((1,), (1,)), ((), ())),
                                  preferred_element_type=jnp.float32) * scale
        if pad_mask is not None:
            sim = jnp.where(pad_mask, -1e30, sim)
        sim = sim - jnp.max(sim, axis=-1, keepdims=True)
        if lowp:                                      # bf16 EUP/VPU (v6e/v7x)
            probs = jnp.exp(sim.astype(cdt))
            denom = jnp.sum(probs.astype(jnp.float32), axis=-1, keepdims=True)
        else:
            probs = jnp.exp(sim)
            denom = jnp.sum(probs, axis=-1, keepdims=True)
        inv = pl.reciprocal(denom, approx=True)
        attn = (probs * inv.astype(probs.dtype)).astype(cdt)
        # retire this head into the output scratch at a static lane offset
        o_scr[:, sl] = jnp.dot(attn, vh, preferred_element_type=jnp.float32).astype(cdt)

    out = jnp.dot(o_scr[...], wo_ref[...], preferred_element_type=jnp.float32)
    out = out + bo_ref[...].astype(jnp.float32) + x.astype(jnp.float32)
    o_ref[0] = out.astype(o_ref.dtype)


def cross_attention_block(x, ctx, p, *, heads, dim_head, self_attn, q_block=None):
    B, N, dim = x.shape
    inner = heads * dim_head
    scale = dim_head ** (-0.5)
    cdt = p["wq"].dtype

    tq = q_block if q_block is not None else _pick_q_tile(N, B)
    assert N % tq == 0, (N, tq)
    nq = N // tq

    # ---- fused single-tile self-attention (no K/V round-trip needed) --------
    if self_attn and nq == 1:
        kernel = functools.partial(_attn_kernel, heads=heads, d_head=dim_head,
                                   scale=scale, m_valid=N, m_pad=N,
                                   lowp=_lowp_softmax(cdt), fused_kv=True)
        in_specs = [pl.BlockSpec((1, N, dim), lambda b: (b, 0, 0)),
                    _const_spec((1, dim)), _const_spec((1, dim)),
                    _const_spec((dim, inner)), _const_spec((dim, inner)),
                    _const_spec((dim, inner)), _const_spec((inner, dim)),
                    _const_spec((1, dim))]
        args = [x, p["ln_g"], p["ln_b"], p["wq"], p["wk"], p["wv"], p["wo"], p["bo"]]
        return pl.pallas_call(
            kernel,
            out_shape=jax.ShapeDtypeStruct((B, N, dim), x.dtype),
            grid=(B,),
            in_specs=in_specs,
            out_specs=pl.BlockSpec((1, N, dim), lambda b: (b, 0, 0)),
            scratch_shapes=[pltpu.VMEM((N, inner), cdt)],
            compiler_params=_cparams(("parallel",)),
        )(*args)

    # ---- general path: K/V projected once per batch, then attend per tile ---
    ctx_arr = x if self_attn else ctx
    M, Cd = ctx_arr.shape[1], ctx_arr.shape[2]
    M_pad = _round_up(M, 128)                     # lane-dense score/attn tiles
    ctx_p = _pad_tokens(ctx_arr, M_pad)
    k_arr, v_arr = _project_kv(ctx_p, p, inner=inner, norm_ctx=self_attn)

    kernel = functools.partial(_attn_kernel, heads=heads, d_head=dim_head,
                               scale=scale, m_valid=M, m_pad=M_pad,
                               lowp=_lowp_softmax(cdt), fused_kv=False)
    in_specs = [pl.BlockSpec((1, tq, dim), lambda b, i: (b, i, 0)),
                pl.BlockSpec((1, M_pad, inner), lambda b, i: (b, 0, 0)),
                pl.BlockSpec((1, M_pad, inner), lambda b, i: (b, 0, 0)),
                _const_spec((1, dim)), _const_spec((1, dim)),
                _const_spec((dim, inner)), _const_spec((inner, dim)),
                _const_spec((1, dim))]
    args = [x, k_arr, v_arr, p["ln_g"], p["ln_b"], p["wq"], p["wo"], p["bo"]]
    return pl.pallas_call(
        kernel,
        out_shape=jax.ShapeDtypeStruct((B, N, dim), x.dtype),
        grid=(B, nq),
        in_specs=in_specs,
        out_specs=pl.BlockSpec((1, tq, dim), lambda b, i: (b, i, 0)),
        scratch_shapes=[pltpu.VMEM((tq, inner), cdt)],
        compiler_params=_cparams(("parallel", "parallel")),
    )(*args)


# ----------------------------------------------------------------------------
# Kernel C: fused  LayerNorm -> GEGLU ([a|gate] matmul, a*gelu(gate)) -> Linear
#           -> residual add.  Weight-resident (nk==1) or K-tiled over ff_inner.
# ----------------------------------------------------------------------------
def _ff_resident_kernel(x_ref, g_ref, b_ref, w1_ref, b1_ref, w2_ref, b2_ref,
                        o_ref, *, tk):
    cdt = w1_ref.dtype
    x = x_ref[0]                                              # (tq, dim)
    xn = _layernorm(x, g_ref[...], b_ref[...]).astype(cdt)
    h12 = (jnp.dot(xn, w1_ref[0], preferred_element_type=jnp.float32)
           + b1_ref[0].astype(jnp.float32))                   # (tq, 2*tk)
    a, gate = h12[:, :tk], h12[:, tk:]
    h = (a * _gelu(gate)).astype(cdt)
    out = jnp.dot(h, w2_ref[0], preferred_element_type=jnp.float32)
    o_ref[0] = (out + b2_ref[...].astype(jnp.float32)
                + x.astype(jnp.float32)).astype(o_ref.dtype)


def _ff_tiled_kernel(x_ref, g_ref, b_ref, w1_ref, b1_ref, w2_ref, b2_ref,
                     o_ref, acc_ref, xn_ref, *, tk):
    k_idx = pl.program_id(2)
    cdt = w1_ref.dtype
    x = x_ref[0]

    @pl.when(k_idx == 0)
    def _init():
        acc_ref[...] = jnp.zeros_like(acc_ref)
        # LayerNorm hoisted out of the reduction axis: computed once per tile
        xn_ref[...] = _layernorm(x, g_ref[...], b_ref[...]).astype(cdt)

    xn = xn_ref[...]
    h12 = (jnp.dot(xn, w1_ref[0], preferred_element_type=jnp.float32)
           + b1_ref[0].astype(jnp.float32))                   # (tq, 2*tk)
    a, gate = h12[:, :tk], h12[:, tk:]
    h = (a * _gelu(gate)).astype(cdt)
    acc_ref[...] += jnp.dot(h, w2_ref[0], preferred_element_type=jnp.float32)

    @pl.when(k_idx == pl.num_programs(2) - 1)
    def _done():
        o_ref[0] = (acc_ref[...] + b2_ref[...].astype(jnp.float32)
                    + x.astype(jnp.float32)).astype(o_ref.dtype)


def feedforward_block(x, p, *, q_block=None):
    B, N, dim = x.shape
    nk, tk = p["nk"], p["tk"]
    cdt = p["w1"].dtype

    tq = q_block if q_block is not None else _pick_q_tile(N, B)
    assert N % tq == 0, (N, tq)
    nq = N // tq

    args = [x, p["ln_g"], p["ln_b"], p["w1"], p["b1"], p["w2"], p["b2"]]

    if nk == 1:
        # weight-resident FF (128 MiB parts): weights loaded once, held in VMEM
        in_specs = [pl.BlockSpec((1, tq, dim), lambda b, i: (b, i, 0)),
                    _const_spec((1, dim)), _const_spec((1, dim)),
                    _const_spec((1, dim, 2 * tk)), _const_spec((1, 1, 2 * tk)),
                    _const_spec((1, tk, dim)), _const_spec((1, dim))]
        return pl.pallas_call(
            functools.partial(_ff_resident_kernel, tk=tk),
            out_shape=jax.ShapeDtypeStruct((B, N, dim), x.dtype),
            grid=(B, nq),
            in_specs=in_specs,
            out_specs=pl.BlockSpec((1, tq, dim), lambda b, i: (b, i, 0)),
            compiler_params=_cparams(("parallel", "parallel")),
        )(*args)

    # K-tiled FF (64 MiB v7x): stream weight chunks, deeper buffering on them
    wbuf = min(nk, 3)
    in_specs = [pl.BlockSpec((1, tq, dim), lambda b, i, k: (b, i, 0)),
                _const_spec((1, dim)), _const_spec((1, dim)),
                _spec((1, dim, 2 * tk), lambda b, i, k: (k, 0, 0), buffers=wbuf),
                pl.BlockSpec((1, 1, 2 * tk), lambda b, i, k: (k, 0, 0)),
                _spec((1, tk, dim), lambda b, i, k: (k, 0, 0), buffers=wbuf),
                _const_spec((1, dim))]
    return pl.pallas_call(
        functools.partial(_ff_tiled_kernel, tk=tk),
        out_shape=jax.ShapeDtypeStruct((B, N, dim), x.dtype),
        grid=(B, nq, nk),
        in_specs=in_specs,
        out_specs=pl.BlockSpec((1, tq, dim), lambda b, i, k: (b, i, 0)),
        scratch_shapes=[pltpu.VMEM((tq, dim), jnp.float32),   # f32 accumulator
                        pltpu.VMEM((tq, dim), cdt)],          # hoisted LN(x)
        compiler_params=_cparams(("parallel", "parallel", "arbitrary")),
    )(*args)


# ----------------------------------------------------------------------------
# one-time parameter preprocessing (layout plumbing kept out of the hot path)
# ----------------------------------------------------------------------------
def prepare_params(params, *, ff_k_block=None):
    ff = params["ff"]
    dim, F = ff["w1a"].shape
    itemsize = jnp.dtype(ff["w1a"].dtype).itemsize

    if ff_k_block is not None:
        tk = ff_k_block
    else:
        resident_w = (dim * 2 * F + F * dim) * itemsize       # single-buffered
        act_est = 512 * 2 * F * 4                              # worst-case [a|gate] f32
        tk = F if (resident_w + act_est) <= 0.7 * _vmem_limit() else _pick_ff_k_tile(F)
    assert F % tk == 0, (F, tk)
    nk = F // tk

    # fuse [a | gate] per ff_inner chunk (done once, outside the forward pass)
    w1a = ff["w1a"].reshape(dim, nk, tk).transpose(1, 0, 2)    # (nk, dim, tk)
    w1b = ff["w1b"].reshape(dim, nk, tk).transpose(1, 0, 2)
    w1 = jnp.concatenate([w1a, w1b], axis=-1)                  # (nk, dim, 2*tk)
    b1 = jnp.concatenate([ff["b1a"].reshape(nk, 1, tk),
                          ff["b1b"].reshape(nk, 1, tk)], axis=-1)
    w2 = ff["w2"].reshape(nk, tk, dim)                         # (nk, tk, dim)

    ff_prep = dict(ln_g=ff["ln_g"], ln_b=ff["ln_b"], w1=w1, b1=b1, w2=w2,
                   b2=ff["b2"], nk=nk, tk=tk)
    return dict(attn1=params["attn1"], attn2=params["attn2"], ff=ff_prep)


# ----------------------------------------------------------------------------
# BasicTransformerBlock forward:
#   x = attn1(norm1(x)) + x ; x = attn2(norm2(x), ctx) + x ; x = ff(norm3(x)) + x
# (dropout p=0 and torch checkpointing are no-ops in this forward pass)
# ----------------------------------------------------------------------------
def basic_transformer_block(x, context, prepared, *, heads, dim_head, q_block=None):
    x = cross_attention_block(x, None, prepared["attn1"], heads=heads,
                              dim_head=dim_head, self_attn=True, q_block=q_block)
    x = cross_attention_block(x, context, prepared["attn2"], heads=heads,
                              dim_head=dim_head, self_attn=False, q_block=q_block)
    x = feedforward_block(x, prepared["ff"], q_block=q_block)
    return x


# ----------------------------------------------------------------------------
# deterministic synthetic parameters (shapes follow the nn.Module __init__;
# weights stored as (in, out) i.e. already transposed vs. torch Linear.weight)
# ----------------------------------------------------------------------------
def init_params(key, dim, context_dim, n_heads, d_head, ff_mult=4):
    inner = n_heads * d_head
    ff_inner = dim * ff_mult
    ks = iter(jax.random.split(key, 20))

    def lin(k, din, dout, s=0.05):
        return jax.random.normal(k, (din, dout), jnp.float32) * s

    def ln():
        return jnp.ones((1, dim), jnp.float32), jnp.zeros((1, dim), jnp.float32)

    g1, b1 = ln()
    attn1 = dict(ln_g=g1, ln_b=b1,
                 wq=lin(next(ks), dim, inner), wk=lin(next(ks), dim, inner),
                 wv=lin(next(ks), dim, inner), wo=lin(next(ks), inner, dim),
                 bo=lin(next(ks), 1, dim, 0.02))
    g2, b2 = ln()
    attn2 = dict(ln_g=g2, ln_b=b2,
                 wq=lin(next(ks), dim, inner), wk=lin(next(ks), context_dim, inner),
                 wv=lin(next(ks), context_dim, inner), wo=lin(next(ks), inner, dim),
                 bo=lin(next(ks), 1, dim, 0.02))
    g3, b3 = ln()
    ff = dict(ln_g=g3, ln_b=b3,
              w1a=lin(next(ks), dim, ff_inner), b1a=lin(next(ks), 1, ff_inner, 0.02),
              w1b=lin(next(ks), dim, ff_inner), b1b=lin(next(ks), 1, ff_inner, 0.02),
              w2=lin(next(ks), ff_inner, dim), b2=lin(next(ks), 1, dim, 0.02))
    return dict(attn1=attn1, attn2=attn2, ff=ff)


# ----------------------------------------------------------------------------
# pure-JAX reference (same math, no Pallas) for a numerical sanity check
# ----------------------------------------------------------------------------
def _ref_attn(x, ctx_in, p, heads, d_head, self_attn):
    scale = d_head ** (-0.5)
    xn = _layernorm(x, p["ln_g"], p["ln_b"])
    ctx = xn if self_attn else ctx_in
    q = xn @ p["wq"]
    k = ctx @ p["wk"]
    v = ctx @ p["wv"]

    def split(t):
        return t.reshape(t.shape[0], t.shape[1], heads, d_head).transpose(0, 2, 1, 3)

    qh, kh, vh = split(q), split(k), split(v)
    sim = jnp.einsum('bhnd,bhmd->bhnm', qh, kh) * scale
    sim = sim - jnp.max(sim, axis=-1, keepdims=True)
    probs = jnp.exp(sim)
    attn = probs / jnp.sum(probs, axis=-1, keepdims=True)
    o = jnp.einsum('bhnm,bhmd->bhnd', attn, vh)
    o = o.transpose(0, 2, 1, 3).reshape(x.shape[0], x.shape[1], heads * d_head)
    return o @ p["wo"] + p["bo"] + x


def _ref_ff(x, p):
    xn = _layernorm(x, p["ln_g"], p["ln_b"])
    a = xn @ p["w1a"] + p["b1a"]
    gate = xn @ p["w1b"] + p["b1b"]
    h = a * (0.5 * gate * (1.0 + jss.erf(gate / _SQRT2)))
    return h @ p["w2"] + p["b2"] + x


def reference_block(x, context, params, *, heads, dim_head):
    x = _ref_attn(x, x, params["attn1"], heads, dim_head, True)
    x = _ref_attn(x, context, params["attn2"], heads, dim_head, False)
    x = _ref_ff(x, params["ff"])
    return x


if __name__ == "__main__":
    B, N, M = 2, 16, 8
    dim, context_dim = 32, 16
    n_heads, d_head = 4, 8

    key = jax.random.PRNGKey(0)
    kx, kc, kp = jax.random.split(key, 3)
    x = jax.random.normal(kx, (B, N, dim), jnp.float32)
    context = jax.random.normal(kc, (B, M, context_dim), jnp.float32)
    params = init_params(kp, dim, context_dim, n_heads, d_head)

    y_ref = reference_block(x, context, params, heads=n_heads, dim_head=d_head)

    # 1) f32, default policy: fused self-attn (single query tile), padded+masked
    #    cross-attn context, weight-resident FF
    prep = prepare_params(params)
    y1 = jax.block_until_ready(
        basic_transformer_block(x, context, prep, heads=n_heads, dim_head=d_head))
    assert y1.shape == (B, N, dim)
    assert bool(jnp.all(jnp.isfinite(y1)))
    err1 = float(jnp.max(jnp.abs(y1 - y_ref)))
    assert err1 < 5e-3, f"f32 mismatch vs reference: max abs err {err1}"

    # 2) f32, forced tiling: per-batch K/V projection + tiled queries for
    #    self-attention, FF ff_inner reduction with hoisted LN + f32 accumulator
    prep_t = prepare_params(params, ff_k_block=64)
    y2 = jax.block_until_ready(
        basic_transformer_block(x, context, prep_t, heads=n_heads, dim_head=d_head,
                                q_block=8))
    err2 = float(jnp.max(jnp.abs(y2 - y_ref)))
    assert err2 < 5e-3, f"tiled f32 mismatch vs reference: max abs err {err2}"

    # 3) bf16 activations/weights with f32 accumulation (bf16 softmax on
    #    bf16-capable chips)
    to_bf16 = lambda t: jax.tree_util.tree_map(lambda a: a.astype(jnp.bfloat16), t)
    to_f32 = lambda t: jax.tree_util.tree_map(lambda a: a.astype(jnp.float32), t)
    xb, cb, pb = to_bf16(x), to_bf16(context), to_bf16(params)
    prep_b = prepare_params(pb)
    y3 = jax.block_until_ready(
        basic_transformer_block(xb, cb, prep_b, heads=n_heads, dim_head=d_head))
    assert y3.dtype == jnp.bfloat16
    y_ref_b = reference_block(xb.astype(jnp.float32), cb.astype(jnp.float32),
                              to_f32(pb), heads=n_heads, dim_head=d_head)
    err3 = float(jnp.max(jnp.abs(y3.astype(jnp.float32) - y_ref_b)))
    assert err3 < 1e-1, f"bf16 mismatch vs reference: max abs err {err3}"

    print("KERNEL_OK")
</pallas_src>

<mosaic_0001>
module attributes {stable_mosaic.version = 11 : i64} {
  func.func @_attn_kernel(%arg0: i32, %arg1: memref<1x16x32xf32, #tpu.memory_space<vmem>>, %arg2: memref<1x32xf32, #tpu.memory_space<vmem>>, %arg3: memref<1x32xf32, #tpu.memory_space<vmem>>, %arg4: memref<32x32xf32, #tpu.memory_space<vmem>>, %arg5: memref<32x32xf32, #tpu.memory_space<vmem>>, %arg6: memref<32x32xf32, #tpu.memory_space<vmem>>, %arg7: memref<32x32xf32, #tpu.memory_space<vmem>>, %arg8: memref<1x32xf32, #tpu.memory_space<vmem>>, %arg9: memref<1x16x32xf32, #tpu.memory_space<vmem>>, %arg10: memref<16x32xf32, #tpu.memory_space<vmem>>) attributes {dimension_semantics = [#tpu.dimension_semantics<parallel>], iteration_bounds = array<i64: 2>, scalar_prefetch = 0 : i64, scratch_operands = 1 : i64, tpu.core_type = #tpu.core_type<tc>, window_params = [{transform_indices = @transform_0, window_bounds = array<i64: 1, 16, 32>}, {pipeline_mode = #tpu.pipeline_mode<synchronous>, transform_indices = @transform_1, window_bounds = array<i64: 1, 32>}, {pipeline_mode = #tpu.pipeline_mode<synchronous>, transform_indices = @transform_2, window_bounds = array<i64: 1, 32>}, {pipeline_mode = #tpu.pipeline_mode<synchronous>, transform_indices = @transform_3, window_bounds = array<i64: 32, 32>}, {pipeline_mode = #tpu.pipeline_mode<synchronous>, transform_indices = @transform_4, window_bounds = array<i64: 32, 32>}, {pipeline_mode = #tpu.pipeline_mode<synchronous>, transform_indices = @transform_5, window_bounds = array<i64: 32, 32>}, {pipeline_mode = #tpu.pipeline_mode<synchronous>, transform_indices = @transform_6, window_bounds = array<i64: 32, 32>}, {pipeline_mode = #tpu.pipeline_mode<synchronous>, transform_indices = @transform_7, window_bounds = array<i64: 1, 32>}, {transform_indices = @transform_8, window_bounds = array<i64: 1, 16, 32>}]} {
    %c0 = arith.constant 0 : index
    %c0_0 = arith.constant 0 : index
    %c0_1 = arith.constant 0 : index
    %0 = vector.load %arg1[%c0, %c0_0, %c0_1] : memref<1x16x32xf32, #tpu.memory_space<vmem>>, vector<1x16x32xf32>
    %1 = vector.shape_cast %0 : vector<1x16x32xf32> to vector<16x32xf32>
    %c0_2 = arith.constant 0 : index
    %c0_3 = arith.constant 0 : index
    %2 = vector.load %arg2[%c0_2, %c0_3] : memref<1x32xf32, #tpu.memory_space<vmem>>, vector<1x32xf32>
    %c0_4 = arith.constant 0 : index
    %c0_5 = arith.constant 0 : index
    %3 = vector.load %arg3[%c0_4, %c0_5] : memref<1x32xf32, #tpu.memory_space<vmem>>, vector<1x32xf32>
    %cst = arith.constant dense<0.000000e+00> : vector<16xf32>
    %4 = vector.multi_reduction <add>, %1, %cst [1] : vector<16x32xf32> to vector<16xf32>
    %5 = vector.shape_cast %4 : vector<16xf32> to vector<16x1xf32>
    %cst_6 = arith.constant 3.200000e+01 : f32
    %6 = vector.broadcast %cst_6 : f32 to vector<16x1xf32>
    %7 = arith.divf %5, %6 : vector<16x1xf32>
    %8 = vector.broadcast %7 : vector<16x1xf32> to vector<16x32xf32>
    %9 = arith.subf %1, %8 : vector<16x32xf32>
    %10 = arith.mulf %9, %9 : vector<16x32xf32>
    %cst_7 = arith.constant dense<0.000000e+00> : vector<16xf32>
    %11 = vector.multi_reduction <add>, %10, %cst_7 [1] : vector<16x32xf32> to vector<16xf32>
    %12 = vector.shape_cast %11 : vector<16xf32> to vector<16x1xf32>
    %cst_8 = arith.constant 3.200000e+01 : f32
    %13 = vector.broadcast %cst_8 : f32 to vector<16x1xf32>
    %14 = arith.divf %12, %13 : vector<16x1xf32>
    %15 = vector.broadcast %7 : vector<16x1xf32> to vector<16x32xf32>
    %16 = arith.subf %1, %15 : vector<16x32xf32>
    %cst_9 = arith.constant 9.99999974E-6 : f32
    %17 = vector.broadcast %cst_9 : f32 to vector<16x1xf32>
    %18 = arith.addf %14, %17 : vector<16x1xf32>
    %19 = math.rsqrt %18 : vector<16x1xf32>
    %20 = vector.broadcast %19 : vector<16x1xf32> to vector<16x32xf32>
    %21 = arith.mulf %16, %20 : vector<16x32xf32>
    %22 = vector.broadcast %2 : vector<1x32xf32> to vector<16x32xf32>
    %23 = arith.mulf %21, %22 : vector<16x32xf32>
    %24 = vector.broadcast %3 : vector<1x32xf32> to vector<16x32xf32>
    %25 = arith.addf %23, %24 : vector<16x32xf32>
    %c0_10 = arith.constant 0 : index
    %c0_11 = arith.constant 0 : index
    %26 = vector.load %arg4[%c0_10, %c0_11] : memref<32x32xf32, #tpu.memory_space<vmem>>, vector<32x32xf32>
    %cst_12 = arith.constant dense<0.000000e+00> : vector<16x32xf32>
    %27 = tpu.matmul %25, %26, %cst_12 {dimension_numbers = #tpu.dot_dimension_numbers<[1], [0], [0], [1], [0, 0, 1, 1], [], []>} : vector<16x32xf32>, vector<32x32xf32>, vector<16x32xf32> -> vector<16x32xf32>
    %c0_13 = arith.constant 0 : index
    %c0_14 = arith.constant 0 : index
    %28 = vector.load %arg5[%c0_13, %c0_14] : memref<32x32xf32, #tpu.memory_space<vmem>>, vector<32x32xf32>
    %cst_15 = arith.constant dense<0.000000e+00> : vector<16x32xf32>
    %29 = tpu.matmul %25, %28, %cst_15 {dimension_numbers = #tpu.dot_dimension_numbers<[1], [0], [0], [1], [0, 0, 1, 1], [], []>} : vector<16x32xf32>, vector<32x32xf32>, vector<16x32xf32> -> vector<16x32xf32>
    %c0_16 = arith.constant 0 : index
    %c0_17 = arith.constant 0 : index
    %30 = vector.load %arg6[%c0_16, %c0_17] : memref<32x32xf32, #tpu.memory_space<vmem>>, vector<32x32xf32>
    %cst_18 = arith.constant dense<0.000000e+00> : vector<16x32xf32>
    %31 = tpu.matmul %25, %30, %cst_18 {dimension_numbers = #tpu.dot_dimension_numbers<[1], [0], [0], [1], [0, 0, 1, 1], [], []>} : vector<16x32xf32>, vector<32x32xf32>, vector<16x32xf32> -> vector<16x32xf32>
    %32 = vector.extract_strided_slice %27 {offsets = [0, 0], sizes = [16, 8], strides = [1, 1]} : vector<16x32xf32> to vector<16x8xf32>
    %33 = vector.extract_strided_slice %29 {offsets = [0, 0], sizes = [16, 8], strides = [1, 1]} : vector<16x32xf32> to vector<16x8xf32>
    %34 = vector.extract_strided_slice %31 {offsets = [0, 0], sizes = [16, 8], strides = [1, 1]} : vector<16x32xf32> to vector<16x8xf32>
    %cst_19 = arith.constant dense<0.000000e+00> : vector<16x16xf32>
    %35 = tpu.matmul %32, %33, %cst_19 {dimension_numbers = #tpu.dot_dimension_numbers<[1], [1], [0], [0], [0, 0, 1, 0], [], []>} : vector<16x8xf32>, vector<16x8xf32>, vector<16x16xf32> -> vector<16x16xf32>
    %cst_20 = arith.constant 0.353553385 : f32
    %36 = vector.broadcast %cst_20 : f32 to vector<16x16xf32>
    %37 = arith.mulf %35, %36 : vector<16x16xf32>
    %cst_21 = arith.constant dense<0xFF800000> : vector<16xf32>
    %38 = vector.multi_reduction <maximumf>, %37, %cst_21 [1] : vector<16x16xf32> to vector<16xf32>
    %39 = vector.shape_cast %38 : vector<16xf32> to vector<16x1xf32>
    %40 = vector.broadcast %39 : vector<16x1xf32> to vector<16x16xf32>
    %41 = arith.subf %37, %40 : vector<16x16xf32>
    %42 = math.exp %41 : vector<16x16xf32>
    %cst_22 = arith.constant dense<0.000000e+00> : vector<16xf32>
    %43 = vector.multi_reduction <add>, %42, %cst_22 [1] : vector<16x16xf32> to vector<16xf32>
    %44 = vector.shape_cast %43 : vector<16xf32> to vector<16x1xf32>
    %45 = tpu.reciprocal %44 {approx = true} : vector<16x1xf32> -> vector<16x1xf32>
    %46 = vector.broadcast %45 : vector<16x1xf32> to vector<16x16xf32>
    %47 = arith.mulf %42, %46 : vector<16x16xf32>
    %cst_23 = arith.constant dense<0.000000e+00> : vector<16x8xf32>
    %48 = tpu.matmul %47, %34, %cst_23 {dimension_numbers = #tpu.dot_dimension_numbers<[1], [0], [0], [1], [0, 0, 1, 1], [], []>} : vector<16x16xf32>, vector<16x8xf32>, vector<16x8xf32> -> vector<16x8xf32>
    %c0_24 = arith.constant 0 : index
    %c0_25 = arith.constant 0 : index
    %49 = vector.load %arg10[%c0_24, %c0_25] : memref<16x32xf32, #tpu.memory_space<vmem>>, vector<16x8xf32>
    tpu.vector_store %arg10[%c0_24, %c0_25], %48 {strides = array<i32>} : memref<16x32xf32, #tpu.memory_space<vmem>>, vector<16x8xf32>,
    %50 = vector.extract_strided_slice %27 {offsets = [0, 8], sizes = [16, 8], strides = [1, 1]} : vector<16x32xf32> to vector<16x8xf32>
    %51 = vector.extract_strided_slice %29 {offsets = [0, 8], sizes = [16, 8], strides = [1, 1]} : vector<16x32xf32> to vector<16x8xf32>
    %52 = vector.extract_strided_slice %31 {offsets = [0, 8], sizes = [16, 8], strides = [1, 1]} : vector<16x32xf32> to vector<16x8xf32>
    %cst_26 = arith.constant dense<0.000000e+00> : vector<16x16xf32>
    %53 = tpu.matmul %50, %51, %cst_26 {dimension_numbers = #tpu.dot_dimension_numbers<[1], [1], [0], [0], [0, 0, 1, 0], [], []>} : vector<16x8xf32>, vector<16x8xf32>, vector<16x16xf32> -> vector<16x16xf32>
    %cst_27 = arith.constant 0.353553385 : f32
    %54 = vector.broadcast %cst_27 : f32 to vector<16x16xf32>
    %55 = arith.mulf %53, %54 : vector<16x16xf32>
    %cst_28 = arith.constant dense<0xFF800000> : vector<16xf32>
    %56 = vector.multi_reduction <maximumf>, %55, %cst_28 [1] : vector<16x16xf32> to vector<16xf32>
    %57 = vector.shape_cast %56 : vector<16xf32> to vector<16x1xf32>
    %58 = vector.broadcast %57 : vector<16x1xf32> to vector<16x16xf32>
    %59 = arith.subf %55, %58 : vector<16x16xf32>
    %60 = math.exp %59 : vector<16x16xf32>
    %cst_29 = arith.constant dense<0.000000e+00> : vector<16xf32>
    %61 = vector.multi_reduction <add>, %60, %cst_29 [1] : vector<16x16xf32> to vector<16xf32>
    %62 = vector.shape_cast %61 : vector<16xf32> to vector<16x1xf32>
    %63 = tpu.reciprocal %62 {approx = true} : vector<16x1xf32> -> vector<16x1xf32>
    %64 = vector.broadcast %63 : vector<16x1xf32> to vector<16x16xf32>
    %65 = arith.mulf %60, %64 : vector<16x16xf32>
    %cst_30 = arith.constant dense<0.000000e+00> : vector<16x8xf32>
    %66 = tpu.matmul %65, %52, %cst_30 {dimension_numbers = #tpu.dot_dimension_numbers<[1], [0], [0], [1], [0, 0, 1, 1], [], []>} : vector<16x16xf32>, vector<16x8xf32>, vector<16x8xf32> -> vector<16x8xf32>
    %c0_31 = arith.constant 0 : index
    %c8 = arith.constant 8 : index
    %67 = vector.load %arg10[%c0_31, %c8] : memref<16x32xf32, #tpu.memory_space<vmem>>, vector<16x8xf32>
    tpu.vector_store %arg10[%c0_31, %c8], %66 {strides = array<i32>} : memref<16x32xf32, #tpu.memory_space<vmem>>, vector<16x8xf32>,
    %68 = vector.extract_strided_slice %27 {offsets = [0, 16], sizes = [16, 8], strides = [1, 1]} : vector<16x32xf32> to vector<16x8xf32>
    %69 = vector.extract_strided_slice %29 {offsets = [0, 16], sizes = [16, 8], strides = [1, 1]} : vector<16x32xf32> to vector<16x8xf32>
    %70 = vector.extract_strided_slice %31 {offsets = [0, 16], sizes = [16, 8], strides = [1, 1]} : vector<16x32xf32> to vector<16x8xf32>
    %cst_32 = arith.constant dense<0.000000e+00> : vector<16x16xf32>
    %71 = tpu.matmul %68, %69, %cst_32 {dimension_numbers = #tpu.dot_dimension_numbers<[1], [1], [0], [0], [0, 0, 1, 0], [], []>} : vector<16x8xf32>, vector<16x8xf32>, vector<16x16xf32> -> vector<16x16xf32>
    %cst_33 = arith.constant 0.353553385 : f32
    %72 = vector.broadcast %cst_33 : f32 to vector<16x16xf32>
    %73 = arith.mulf %71, %72 : vector<16x16xf32>
    %cst_34 = arith.constant dense<0xFF800000> : vector<16xf32>
    %74 = vector.multi_reduction <maximumf>, %73, %cst_34 [1] : vector<16x16xf32> to vector<16xf32>
    %75 = vector.shape_cast %74 : vector<16xf32> to vector<16x1xf32>
    %76 = vector.broadcast %75 : vector<16x1xf32> to vector<16x16xf32>
    %77 = arith.subf %73, %76 : vector<16x16xf32>
    %78 = math.exp %77 : vector<16x16xf32>
    %cst_35 = arith.constant dense<0.000000e+00> : vector<16xf32>
    %79 = vector.multi_reduction <add>, %78, %cst_35 [1] : vector<16x16xf32> to vector<16xf32>
    %80 = vector.shape_cast %79 : vector<16xf32> to vector<16x1xf32>
    %81 = tpu.reciprocal %80 {approx = true} : vector<16x1xf32> -> vector<16x1xf32>
    %82 = vector.broadcast %81 : vector<16x1xf32> to vector<16x16xf32>
    %83 = arith.mulf %78, %82 : vector<16x16xf32>
    %cst_36 = arith.constant dense<0.000000e+00> : vector<16x8xf32>
    %84 = tpu.matmul %83, %70, %cst_36 {dimension_numbers = #tpu.dot_dimension_numbers<[1], [0], [0], [1], [0, 0, 1, 1], [], []>} : vector<16x16xf32>, vector<16x8xf32>, vector<16x8xf32> -> vector<16x8xf32>
    %c0_37 = arith.constant 0 : index
    %c16 = arith.constant 16 : index
    %85 = vector.load %arg10[%c0_37, %c16] : memref<16x32xf32, #tpu.memory_space<vmem>>, vector<16x8xf32>
    tpu.vector_store %arg10[%c0_37, %c16], %84 {strides = array<i32>} : memref<16x32xf32, #tpu.memory_space<vmem>>, vector<16x8xf32>,
    %86 = vector.extract_strided_slice %27 {offsets = [0, 24], sizes = [16, 8], strides = [1, 1]} : vector<16x32xf32> to vector<16x8xf32>
    %87 = vector.extract_strided_slice %29 {offsets = [0, 24], sizes = [16, 8], strides = [1, 1]} : vector<16x32xf32> to vector<16x8xf32>
    %88 = vector.extract_strided_slice %31 {offsets = [0, 24], sizes = [16, 8], strides = [1, 1]} : vector<16x32xf32> to vector<16x8xf32>
    %cst_38 = arith.constant dense<0.000000e+00> : vector<16x16xf32>
    %89 = tpu.matmul %86, %87, %cst_38 {dimension_numbers = #tpu.dot_dimension_numbers<[1], [1], [0], [0], [0, 0, 1, 0], [], []>} : vector<16x8xf32>, vector<16x8xf32>, vector<16x16xf32> -> vector<16x16xf32>
    %cst_39 = arith.constant 0.353553385 : f32
    %90 = vector.broadcast %cst_39 : f32 to vector<16x16xf32>
    %91 = arith.mulf %89, %90 : vector<16x16xf32>
    %cst_40 = arith.constant dense<0xFF800000> : vector<16xf32>
    %92 = vector.multi_reduction <maximumf>, %91, %cst_40 [1] : vector<16x16xf32> to vector<16xf32>
    %93 = vector.shape_cast %92 : vector<16xf32> to vector<16x1xf32>
    %94 = vector.broadcast %93 : vector<16x1xf32> to vector<16x16xf32>
    %95 = arith.subf %91, %94 : vector<16x16xf32>
    %96 = math.exp %95 : vector<16x16xf32>
    %cst_41 = arith.constant dense<0.000000e+00> : vector<16xf32>
    %97 = vector.multi_reduction <add>, %96, %cst_41 [1] : vector<16x16xf32> to vector<16xf32>
    %98 = vector.shape_cast %97 : vector<16xf32> to vector<16x1xf32>
    %99 = tpu.reciprocal %98 {approx = true} : vector<16x1xf32> -> vector<16x1xf32>
    %100 = vector.broadcast %99 : vector<16x1xf32> to vector<16x16xf32>
    %101 = arith.mulf %96, %100 : vector<16x16xf32>
    %cst_42 = arith.constant dense<0.000000e+00> : vector<16x8xf32>
    %102 = tpu.matmul %101, %88, %cst_42 {dimension_numbers = #tpu.dot_dimension_numbers<[1], [0], [0], [1], [0, 0, 1, 1], [], []>} : vector<16x16xf32>, vector<16x8xf32>, vector<16x8xf32> -> vector<16x8xf32>
    %c0_43 = arith.constant 0 : index
    %c24 = arith.constant 24 : index
    %103 = vector.load %arg10[%c0_43, %c24] : memref<16x32xf32, #tpu.memory_space<vmem>>, vector<16x8xf32>
    tpu.vector_store %arg10[%c0_43, %c24], %102 {strides = array<i32>} : memref<16x32xf32, #tpu.memory_space<vmem>>, vector<16x8xf32>,
    %c0_44 = arith.constant 0 : index
    %c0_45 = arith.constant 0 : index
    %104 = vector.load %arg10[%c0_44, %c0_45] : memref<16x32xf32, #tpu.memory_space<vmem>>, vector<16x32xf32>
    %c0_46 = arith.constant 0 : index
    %c0_47 = arith.constant 0 : index
    %105 = vector.load %arg7[%c0_46, %c0_47] : memref<32x32xf32, #tpu.memory_space<vmem>>, vector<32x32xf32>
    %cst_48 = arith.constant dense<0.000000e+00> : vector<16x32xf32>
    %106 = tpu.matmul %104, %105, %cst_48 {dimension_numbers = #tpu.dot_dimension_numbers<[1], [0], [0], [1], [0, 0, 1, 1], [], []>} : vector<16x32xf32>, vector<32x32xf32>, vector<16x32xf32> -> vector<16x32xf32>
    %c0_49 = arith.constant 0 : index
    %c0_50 = arith.constant 0 : index
    %107 = vector.load %arg8[%c0_49, %c0_50] : memref<1x32xf32, #tpu.memory_space<vmem>>, vector<1x32xf32>
    %108 = vector.broadcast %107 : vector<1x32xf32> to vector<16x32xf32>
    %109 = arith.addf %106, %108 : vector<16x32xf32>
    %110 = arith.addf %109, %1 : vector<16x32xf32>
    %c0_51 = arith.constant 0 : index
    %c0_52 = arith.constant 0 : index
    %c0_53 = arith.constant 0 : index
    %111 = vector.load %arg9[%c0_51, %c0_52, %c0_53] : memref<1x16x32xf32, #tpu.memory_space<vmem>>, vector<1x16x32xf32>
    %112 = vector.shape_cast %111 : vector<1x16x32xf32> to vector<16x32xf32>
    %113 = vector.shape_cast %110 : vector<16x32xf32> to vector<1x16x32xf32>
    tpu.vector_store %arg9[%c0_51, %c0_52, %c0_53], %113 {strides = array<i32>} : memref<1x16x32xf32, #tpu.memory_space<vmem>>, vector<1x16x32xf32>,
    return
  }
  func.func @transform_0(%arg0: i32) -> (i32, i32, i32) {
    %c0_i32 = arith.constant 0 : i32
    %c0_i32_0 = arith.constant 0 : i32
    %c0_i32_1 = arith.constant 0 : i32
    return %arg0, %c0_i32, %c0_i32_0 : i32, i32, i32
  }
  func.func @transform_1(%arg0: i32) -> (i32, i32) {
    %c0_i32 = arith.constant 0 : i32
    %c0_i32_0 = arith.constant 0 : i32
    %c0_i32_1 = arith.constant 0 : i32
    return %c0_i32, %c0_i32_0 : i32, i32
  }
  func.func @transform_2(%arg0: i32) -> (i32, i32) {
    %c0_i32 = arith.constant 0 : i32
    %c0_i32_0 = arith.constant 0 : i32
    %c0_i32_1 = arith.constant 0 : i32
    return %c0_i32, %c0_i32_0 : i32, i32
  }
  func.func @transform_3(%arg0: i32) -> (i32, i32) {
    %c0_i32 = arith.constant 0 : i32
    %c0_i32_0 = arith.constant 0 : i32
    %c0_i32_1 = arith.constant 0 : i32
    return %c0_i32, %c0_i32_0 : i32, i32
  }
  func.func @transform_4(%arg0: i32) -> (i32, i32) {
    %c0_i32 = arith.constant 0 : i32
    %c0_i32_0 = arith.constant 0 : i32
    %c0_i32_1 = arith.constant 0 : i32
    return %c0_i32, %c0_i32_0 : i32, i32
  }
  func.func @transform_5(%arg0: i32) -> (i32, i32) {
    %c0_i32 = arith.constant 0 : i32
    %c0_i32_0 = arith.constant 0 : i32
    %c0_i32_1 = arith.constant 0 : i32
    return %c0_i32, %c0_i32_0 : i32, i32
  }
  func.func @transform_6(%arg0: i32) -> (i32, i32) {
    %c0_i32 = arith.constant 0 : i32
    %c0_i32_0 = arith.constant 0 : i32
    %c0_i32_1 = arith.constant 0 : i32
    return %c0_i32, %c0_i32_0 : i32, i32
  }
  func.func @transform_7(%arg0: i32) -> (i32, i32) {
    %c0_i32 = arith.constant 0 : i32
    %c0_i32_0 = arith.constant 0 : i32
    %c0_i32_1 = arith.constant 0 : i32
    return %c0_i32, %c0_i32_0 : i32, i32
  }
  func.func @transform_8(%arg0: i32) -> (i32, i32, i32) {
    %c0_i32 = arith.constant 0 : i32
    %c0_i32_0 = arith.constant 0 : i32
    %c0_i32_1 = arith.constant 0 : i32
    return %arg0, %c0_i32, %c0_i32_0 : i32, i32, i32
  }
}

</mosaic_0001>

<bundles_post_ra>
// kernel: tpu_custom_call.1
= control target key start
LH: loop header
LB: loop body
LE: loop exit
PB: predicated region body
PF: predicated region fallthrough
CT: control target
= control target key end

     0   :  { %s2725_s0 = inlined_call_operand.hbm [shape: f32[2,16,32], index: 0, kind: input, shape index: {}]   ;;  %s2726_s1 = inlined_call_operand.vmem [shape: f32[1,32], index: 1, kind: input, shape index: {}]   ;;  %s2727_s2 = inlined_call_operand.vmem [shape: f32[1,32], index: 2, kind: input, shape index: {}]   ;;  %s2728_s3 = inlined_call_operand.hbm [shape: f32[32,32], index: 3, kind: input, shape index: {}]   ;;  %s2729_s4 = inlined_call_operand.hbm [shape: f32[32,32], index: 4, kind: input, shape index: {}]   ;;  %s2730_s5 = inlined_call_operand.hbm [shape: f32[32,32], index: 5, kind: input, shape index: {}]   ;;  %s2731_s6 = inlined_call_operand.hbm [shape: f32[32,32], index: 6, kind: input, shape index: {}]   ;;  %s2732_s7 = inlined_call_operand.vmem [shape: f32[1,32], index: 7, kind: input, shape index: {}]   ;;  %s2733_s8 = inlined_call_operand.hbm [shape: f32[2,16,32], index: 8, kind: output, shape index: {}]  }
   0x1   :  { %2740 = sst [smem:[#allocation17_spill]] %s2728_s3 }
   0x2   :  { %2741 = sst [smem:[#allocation18_spill]] %s2729_s4 }
   0x3   :  { %13 = vsyncpa [#allocation4], 0 }
   0x4   :  { %15 = vsyncpa [#allocation4 + $0x1], 0 }
   0x5   :  { %16 = vsyncpa [#allocation7], 0 }
   0x6   :  { %17 = vsyncpa [#allocation10], 0 }
   0x7   :  { %18 = vsyncpa [#allocation5], 0 }
   0x8   :  { %20 = vsyncpa [#allocation5 + $0x1], 0  ;;  %s2346_s27 = smov 0   ;;  %s2348_s28 = smov 0  }
   0x9   :  { %s2350_s29 = smov 0   ;;  %s2352_s30 = smov 0  }
   0xa LB: > { %s2367_s9 = sadd.s32 4294967295, %s2284_s30   ;;  %s1733_s10 = sadd.s32 4294967294, %s2284_s30   ;;  %s2284_s30 = sphi %s2352_s30, %s2764_s30   ;;  %s2280_s29 = sphi %s2350_s29, %s2763_s29   ;;  %s2276_s28 = sphi %s2348_s28, %s2762_s28   ;;  %s2272_s27 = sphi %s2346_s27, %s2761_s27  }
   0xb   : > { %p46_p0 = scmp.ne.s32.totalorder %s2276_s28, %s2272_s27  ;;  %p2734_p1 = scmp.eq.s32.totalorder %s2367_s9, 0 }
   0xc   : > { %p217_p2 = scmp.eq.s32.totalorder %s2367_s9, 1  ;;  %p223_p3 = scmp.eq.s32.totalorder %s1733_s10, 1 }
   0xd   : > { %p2376_p4 = por %p2734_p1, %p46_p0  ;;  %p1734_p5 = scmp.ge.s32.totalorder %s2284_s30, 1 }
   0xe   : > { %p2381_p6 = por %p223_p3, %p46_p0  ;;  %p230_p7 = scmp.lt.s32.totalorder %s2284_s30, 3 }
   0xf   : > { %s2742_s11 = scalar_select %p2376_p4, 1, 0 }
  0x10   : > { %s2743_s12 = scalar_select %p2381_p6, 1, 0 }
  0x11   : > { %p2386_p8 = pnand %p1734_p5, %p230_p7  ;;  %s2286_s14 = smov [#allocation6]  }
  0x12   : > { %s248_s15 = sshll.u32 %s2286_s14, 4  ;;  %s2287_s17 = smov [#allocation9]   ;;  %s249_s15 = int_to_ptr.vmem [resolvable:$true] %s248_s15 }
  0x13   : > { %s2744_s13 = scalar_select %p2386_p8, 1, 0 }
  0x14   : > { %p1968_p9 = pneg %p2386_p8  ;;  %s274_s18 = sshll.u32 %s2287_s17, 4  ;;  %s275_s18 = int_to_ptr.vmem [resolvable:$true] %s274_s18 }
  0x15   : > { %s2288_s19 = smov [#allocation8]   ;;  %s2091_s21 = scalar_lea.vmem %s249_s15, 512 }
  0x16   : > { %p2395_p11 = pnand %p1968_p9, %p2734_p1  ;;  %s261_s20 = sshll.u32 %s2288_s19, 4  ;;  %s262_s20 = int_to_ptr.vmem [resolvable:$true] %s261_s20 }
  0x17   : > { %p2092_p13 = scmp.ne.s32.totalorder %s249_s15, %s2091_s21  ;;  %p2099_p5 = scmp.lt.s32.totalorder %s249_s15, %s249_s15 }
  0x18   : > { %p2082_p12 = pneg %p2395_p11  ;;  %p2100_p7 = scmp.lt.s32.totalorder %s2091_s21, %s2091_s21 }
  0x1a   : > { %p2094_p0 = pnand %p2092_p13, %p2082_p12  ;;  %p2101_p9 = por %p2100_p7, %p2099_p5 }
  0x1c   : > { %p2095_p3 = pneg %p2094_p0 }
  0x1e   : > { %p2102_p10 = pnand %p2101_p9, %p2095_p3 }
  0x20   : > { %2105 = shalt.err (!%p2102_p10)
}
  0x21   : > { %s2735_s22 = smov 128   ;;  %s2736_s23 = smov 8  }
  0x22   : > { %s2746_s3 = sld [smem:[#allocation17_spill]]  ;;  %s2117_s26 = scalar_lea.vmem %s275_s18, 512 }
  0x23   : > { %p2118_p13 = scmp.ne.s32.totalorder %s275_s18, %s2117_s26  ;;  %p2125_p3 = scmp.lt.s32.totalorder %s275_s18, %s275_s18 }
  0x24   : > { %p2126_p10 = scmp.lt.s32.totalorder %s2117_s26, %s2117_s26 }
  0x25   : > { %p2120_p0 = pnand %p2118_p13, %p2082_p12 }
  0x26   : > { %p2127_p7 = por %p2126_p10, %p2125_p3 }
  0x27   : > { %p2121_p5 = pneg %p2120_p0 }
  0x28   : > { %1971 = dma.hbm_to_vmem [thread:$0]  (!%p2395_p11), %s2746_s3, 512, %s249_s15, [#allocation7], %s2735_s22, %s2735_s22, %s2736_s23  }
  0x29   : > { %p2128_p9 = pnand %p2127_p7, %p2121_p5 }
  0x2b   : > { %2131 = shalt.err (!%p2128_p9)
}
  0x2c   : > { %1977 = dma.hbm_to_vmem [thread:$0]  (!%p2395_p11), %s2730_s5, 512, %s275_s18, [#allocation10], %s2735_s22, %s2735_s22, %s2736_s23  }
  0x2d   : > { %s2143_s15 = scalar_lea.vmem %s262_s20, 512  ;;  %p2151_p3 = scmp.lt.s32.totalorder %s262_s20, %s262_s20 }
  0x2e   : > { %p2144_p1 = scmp.ne.s32.totalorder %s262_s20, %s2143_s15  ;;  %p2152_p5 = scmp.lt.s32.totalorder %s2143_s15, %s2143_s15 }
  0x30   : > { %p2146_p13 = pnand %p2144_p1, %p2082_p12  ;;  %p2153_p10 = por %p2152_p5, %p2151_p3 }
  0x32   : > { %p2147_p0 = pneg %p2146_p13 }
  0x34   : > { %p2154_p7 = pnand %p2153_p10, %p2147_p0 }
  0x36   : > { %2157 = shalt.err (!%p2154_p7)
}
  0x37   : > { %s2747_s4 = sld [smem:[#allocation18_spill]]  ;;  %s2291_s18 = smov [#allocation11]  }
  0x38   : > { %s287_s21 = sshll.u32 %s2291_s18, 4  ;;  %s288_s21 = int_to_ptr.vmem [resolvable:$true] %s287_s21 }
  0x39   : > { %s2169_s24 = scalar_lea.vmem %s288_s21, 512  ;;  %p2177_p0 = scmp.lt.s32.totalorder %s288_s21, %s288_s21 }
  0x3a   : > { %p2170_p1 = scmp.ne.s32.totalorder %s288_s21, %s2169_s24  ;;  %p2178_p3 = scmp.lt.s32.totalorder %s2169_s24, %s2169_s24 }
  0x3c   : > { %p2172_p9 = pnand %p2170_p1, %p2082_p12  ;;  %p2179_p5 = por %p2178_p3, %p2177_p0 }
  0x3d   : > { %1974 = dma.hbm_to_vmem [thread:$0]  (!%p2395_p11), %s2747_s4, 512, %s262_s20, [#allocation7], %s2735_s22, %s2735_s22, %s2736_s23  }
  0x3e   : > { %p2173_p13 = pneg %p2172_p9 }
  0x40   : > { %p2180_p10 = pnand %p2179_p5, %p2173_p13 }
  0x42   : > { %2183 = shalt.err (!%p2180_p10)
}
  0x43   : > { %1980 = dma.hbm_to_vmem [thread:$0]  (!%p2395_p11), %s2731_s6, 512, %s288_s21, [#allocation10], %s2735_s22, %s2735_s22, %s2736_s23  }
  0x44   : > { %s2446_s26 = sadd.s32 1, %s2284_s30   ;;  %s33_s16 = sadd.s32 1, %s2280_s29 }
  0x45   : > { %s30_s10 = ssub.s32 %s2284_s30, %s2446_s26  ;;  %p40_p12 = scmp.ne.s32.totalorder %s2280_s29, %s2276_s28 }
  0x46   : > { %p31_p7 = scmp.eq.s32.totalorder %s30_s10, 0  ;;  %p41_p1 = scmp.eq.s32.totalorder %s2284_s30, 0 }
  0x47   : > { %p2456_p9 = por %p217_p2, %p40_p12  ;;  %p1993_p13 = scmp.lt.s32.totalorder %s2284_s30, 2 }
  0x48   : > { %s2462_s15 = scalar_select %p31_p7, %s2280_s29, %s33_s16  }
  0x49   : > { %s2748_s14 = scalar_select %p2456_p9, 1, 0 }
  0x4a   : > { %p42_p0 = por %p41_p1, %p40_p12  ;;  %s304_s17 = sand.u32 1, %s2280_s29  }
  0x4b   : > { %s1740_s19 = sshll.u32 %s304_s17, 4  ;;  %s1790_s18 = sshll.u32 %s2284_s30, 8 }
  0x4c   : > { %s2469_s20 = scalar_lea.hbm %s2725_s0, %s1790_s18  ;;  %s308_s25 = scalar_lea.vmem [#allocation3], %s1740_s19 }
  0x4d   : > { %s315_s10 = sshll.u32 %s308_s25, 4  ;;  %p2473_p2 = pnand %p1993_p13, %p42_p0  ;;  %s2471_s10 = int_to_ptr.vmem [resolvable:$true] %s315_s10 }
  0x4e   : > { %s2477_s16 = scalar_lea.sflag [#allocation4], %s304_s17  ;;  %s2184_s23 = scalar_lea.hbm %s2469_s20, 256 }
  0x4f   : > { %p2185_p11 = scmp.ne.s32.totalorder %s2469_s20, %s2184_s23  ;;  %p2186_p3 = pneg %p2473_p2 }
  0x50   : > { %s2189_s19 = scalar_lea.hbm %s2725_s0, 512  ;;  %p2190_p12 = scmp.lt.s32.totalorder %s2469_s20, %s2725_s0 }
  0x51   : > { %p2187_p5 = pnand %p2186_p3, %p2185_p11  ;;  %p2191_p7 = scmp.lt.s32.totalorder %s2189_s19, %s2184_s23 }
  0x53   : > { %p2188_p10 = pneg %p2187_p5  ;;  %p2192_p1 = por %p2191_p7, %p2190_p12 }
  0x55   : > { %p2193_p13 = pnand %p2192_p1, %p2188_p10 }
  0x57   : > { %2196 = shalt.err (!%p2193_p13)
}
  0x58   : > { %s2197_s17 = scalar_lea.vmem %s2471_s10, 256  ;;  %s2292_s3 = smov [#allocation3]  }
  0x59   : > { %p2198_p0 = scmp.ne.s32.totalorder %s2471_s10, %s2197_s17  ;;  %s2202_s4 = sshll.u32 %s2292_s3, 4  ;;  %s2203_s4 = int_to_ptr.vmem [resolvable:$false] %s2202_s4 }
  0x5a   : > { %s2204_s18 = scalar_lea.vmem %s2203_s4, 512  ;;  %p2205_p5 = scmp.lt.s32.totalorder %s2471_s10, %s2203_s4 }
  0x5b   : > { %p2200_p6 = pnand %p2198_p0, %p2186_p3  ;;  %p2206_p9 = scmp.lt.s32.totalorder %s2204_s18, %s2197_s17 }
  0x5d   : > { %p2201_p11 = pneg %p2200_p6  ;;  %p2207_p4 = por %p2206_p9, %p2205_p5 }
  0x5f   : > { %p2208_p8 = pnand %p2207_p4, %p2201_p11 }
  0x61   : > { %2211 = shalt.err (!%p2208_p8)
}
  0x62   : > { %s2750_s23 = smov 8   ;;  %s2751_s21 = smov 128  }
  0x63   : > { %1984 = dma.hbm_to_vmem [thread:$0]  (!%p2473_p2), %s2469_s20, 256, %s2471_s10, %s2477_s16, %s2751_s21, %s2751_s21, %s2750_s23  }
  0x64   : > { %p2752_p6 = scmp.ne.s32.totalorder %s2744_s13, 0 }
  0x65   : > { %s2504_s3 = sand.u32 (!%p2752_p6), 1, %s2276_s28   ;;  %p2753_p4 = scmp.ne.s32.totalorder (!%p2752_p6), %s2742_s11, 0 }
  0x66   : > { %327 = sbr.rel (%p2752_p6) target bundleno = 3230 (0xc9e), region = 52  ;;  %s1744_s4 = sshll.u32 (!%p2752_p6), %s2504_s3, 4 }
  0x67   : > { %s330_s19 = scalar_lea.sflag (!%p2752_p6), [#allocation4], %s2504_s3  ;;  %s333_s22 = scalar_lea.vmem (!%p2752_p6), [#allocation3], %s1744_s4 }
  0x6b   : > { %2255 = dma.done.wait (%p2753_p4), %s330_s19, 256  }
  0x6c   : > { %2257 = vsyncadd (%p2753_p4), %s330_s19, 4294967040  ;;  %p2754_p8 = scmp.eq.s32.totalorder %s2367_s9, 0 }
  0x6e   : > { %2259 = dma.done.wait (%p2754_p8), [#allocation7], 1024   ;;  %p2755_p9 = pmov %p2754_p8 }
  0x6f   : > { %p2756_p2 = pmov %p2754_p8 }
  0x70   : > { %2261 = vsyncadd (%p2755_p9), [#allocation7], 4294966272 }
  0x71   : > { %2263 = dma.done.wait (%p2756_p2), [#allocation10], 1024   ;;  %p2757_p3 = pmov %p2756_p2 }
  0x72   : > { %vm386_vm0 = vcmask 261120   ;;  %v2522_v0 = vld [vmem:[%s333_s22] sm:$0xff]  ;;  %v2524_v1 = vld [vmem:[%s333_s22 + $0x8] sm:$0xff]  ;;  %vm673_vm1 = vcmask 64512   ;;  %vm763_vm2 = vcmask 130048   ;;  %s2293_s16 = smov 120  }
  0x73   : > { %2265 = vsyncadd (%p2757_p3), [#allocation10], 4294966272  ;;  %v387_v2 = vsel %vm386_vm0, %v2522_v0, 0.0  ;;  %v390_v3 = vsel %vm386_vm0, %v2524_v1, 0.0  ;;  %v433_v14 = vld [vmem:[#allocation6 + $0x18] sm:$0xff]  ;;  %v432_v16 = vld [vmem:[#allocation6 + $0x10] sm:$0xff] }
  0x74   : > { %388 = vadd.xlane.f32.xlu0 %v387_v2  ;;  %v518_v15 = vld [vmem:[#allocation8 + $0x18] sm:$0xff]  ;;  %1848 = vmatprep.subr.mxu0 %v433_v14  ;;  %v517_v17 = vld [vmem:[#allocation8 + $0x10] sm:$0xff]  ;;  %v431_v18 = vld [vmem:[#allocation6 + $0x8] sm:$0xff]  ;;  %s2294_s24 = smov 112   ;;  %s2295_s25 = smov 104   ;;  %vm1081_vm3 = vcmask 130112  }
  0x75   : > { %1859 = vmatprep.subr.mxu1 %v518_v15  ;;  %1849 = vmatpush3.msra.mxu0 %v433_v14  ;;  %v516_v19 = vld [vmem:[#allocation8 + $0x8] sm:$0xff]  ;;  %v430_v20 = vld [vmem:[#allocation6] sm:$0xff]  ;;  %v597_v22 = vld [vmem:[#allocation9 + $0x18] sm:$0xff]  ;;  %s2296_s17 = smov 8   ;;  %s2297_s18 = smov 16   ;;  %vm1294_vm4 = vcmask 195712  }
  0x76   : > { %1860 = vmatpush3.msra.mxu1 %v518_v15  ;;  %1850 = vmatprep.subr.mxu0 %v432_v16  ;;  %v515_v21 = vld [vmem:[#allocation8] sm:$0xff]  ;;  %v1750_v30 = vld [vmem:[%s2726_s1] ss:$0 sm:$0xff]  ;;  %v595_v40 = vld [vmem:[#allocation9 + $0x8] sm:$0xff]  ;;  %s2298_s23 = smov 24   ;;  %vm1507_vm5 = vcmask 261312  }
  0x77   : > { %1861 = vmatprep.subr.mxu1 %v517_v17  ;;  %1851 = vmatpush3.msra.mxu0 %v432_v16  ;;  %v1751_v32 = vld [vmem:[%s2727_s2] ss:$0 sm:$0xff]  ;;  %v594_v41 = vld [vmem:[#allocation9] sm:$0xff]  ;;  %s1791_s22 = sshll.u32 %s2367_s9, 8  ;;  %s381_s11 = scalar_lea.vmem [#allocation12], %s1744_s4 }
  0x78   : > { %391 = vadd.xlane.f32.xlu0 %v390_v3  ;;  %1862 = vmatpush3.msra.mxu1 %v517_v17  ;;  %v596_v39 = vld [vmem:[#allocation9 + $0x10] sm:$0xff]  ;;  %s1622_s13 = sshll.u32 %s381_s11, 4  ;;  %s1609_s9 = scalar_lea.sflag [#allocation5], %s2504_s3  ;;  %s2680_s13 = int_to_ptr.vmem [resolvable:$true] %s1622_s13 }
  0x79   : > { %1852 = vmatprep.subr.mxu0 %v431_v18  ;;  %1863 = vmatprep.subr.mxu1 %v516_v19  ;;  %s2212_s4 = scalar_lea.vmem %s2680_s13, 256  ;;  %p2758_p12 = scmp.ne.s32.totalorder %s2748_s14, 0 }
  0x7a   : > { %1853 = vmatpush3.msra.mxu0 %v431_v18  ;;  %1864 = vmatpush3.msra.mxu1 %v516_v19  ;;  %p2213_p10 = scmp.ne.s32.totalorder %s2680_s13, %s2212_s4 }
  0x7b   : > { %1854 = vmatprep.subr.mxu0 %v430_v20  ;;  %1865 = vmatprep.subr.mxu1 %v515_v21 }
  0x7c   : > { %1855 = vmatpush3.msra.mxu0 %v430_v20  ;;  %1866 = vmatpush3.msra.mxu1 %v515_v21  ;;  %p2214_p7 = pnand %p2213_p10, %p2758_p12 }
  0x7d   : > { %1870 = vmatprep.subr.mxu0 %v597_v22 }
  0x7e   : > { %p2215_p1 = pneg %p2214_p7 }
  0xfd   : > { %v389_v4 = vpop.xlane.xlu0 %388 }
  0xfe   : > { %v394_v5 = vmul.f32 0.03125, %v389_v4 }
 0x100   : > { %v396_v6 = vsub.f32 %v2522_v0, %v394_v5 }
 0x101   : > { %v392_v7 = vpop.xlane.xlu0 %391 }
 0x102   : > { %v395_v8 = vmul.f32 0.03125, %v392_v7  ;;  %v398_v9 = vmul.f32 %v396_v6, %v396_v6 }
 0x104   : > { %v397_v10 = vsub.f32 %v2524_v1, %v395_v8  ;;  %v400_v11 = vsel %vm386_vm0, %v398_v9, 0.0 }
 0x105   : > { %401 = vadd.xlane.f32.xlu1 %v400_v11 }
 0x106   : > { %v399_v12 = vmul.f32 %v397_v10, %v397_v10 }
 0x108   : > { %v403_v13 = vsel %vm386_vm0, %v399_v12, 0.0 }
 0x109   : > { %404 = vadd.xlane.f32.xlu1 %v403_v13 }
 0x18e   : > { %v402_v23 = vpop.xlane.xlu1 %401 }
 0x18f   : > { %v406_v24 = vmul.f32 0.03125, %v402_v23 }
 0x191   : > { %v408_v25 = vadd.f32 1e-05, %v406_v24 }
 0x192   : > { %v405_v26 = vpop.xlane.xlu1 %404 }
 0x193   : > { %2044 = vrsqrt.f32 %v408_v25  ;;  %v407_v27 = vmul.f32 0.03125, %v405_v26 }
 0x195   : > { %v409_v28 = vadd.f32 1e-05, %v407_v27 }
 0x197   : > { %2046 = vrsqrt.f32 %v409_v28 }
 0x1a0   : > { %v2045_v29 = vpop.eup %2044 }
 0x1a1   : > { %v412_v31 = vmul.f32 %v2045_v29, %v396_v6 }
 0x1a3   : > { %v420_v33 = vmul.f32 %v1750_v30, %v412_v31 }
 0x1a4   : > { %v2047_v34 = vpop.eup %2046 }
 0x1a5   : > { %v413_v35 = vmul.f32 %v2047_v34, %v397_v10  ;;  %v428_v36 = vadd.f32 %v1751_v32, %v420_v33 }
 0x1a7   : > { %v421_v37 = vmul.f32 %v1750_v30, %v413_v35  ;;  %1856 = vmatprep.mubr.msk.f32.mxu0 %vm386_vm0, %v428_v36  ;;  %1867 = vmatprep.mubr.msk.f32.mxu1 %vm386_vm0, %v428_v36 }
 0x1a9   : > { %v429_v38 = vadd.f32 %v1751_v32, %v421_v37 }
 0x1ab   : > { %1857 = vmatmul.mubr.msk.f32.vlgmr.msra.gmra.mxu0 %vm386_vm0, %v429_v38  ;;  %1868 = vmatmul.mubr.msk.f32.vlgmr.msra.gmra.mxu1 %vm386_vm0, %v429_v38 }
 0x1ac   : > { %1871 = vmatpush3.msra.mxu0 %v597_v22  ;;  %1878 = vmatprep.mubr.msk.f32.mxu0 %vm386_vm0, %v428_v36 }
 0x1ad   : > { %1872 = vmatprep.subr.mxu0 %v596_v39 }
 0x1ae   : > { %1873 = vmatpush3.msra.mxu0 %v596_v39 }
 0x1af   : > { %1874 = vmatprep.subr.mxu0 %v595_v40 }
 0x1b0   : > { %1875 = vmatpush3.msra.mxu0 %v595_v40 }
 0x1b1   : > { %1876 = vmatprep.subr.mxu0 %v594_v41 }
 0x1b2   : > { %1877 = vmatpush3.msra.mxu0 %v594_v41 }
 0x1b3   : > { %1879 = vmatmul.mubr.msk.f32.vlgmr.msra.gmra.mxu0 %vm386_vm0, %v429_v38 }
 0x26b   : > { %v2546_v42 = vpop.f32.mrf.mxu0  ;;  %v2548_v43 = vpop.f32.mrf.mxu1 }
 0x26c   : > { %1881 = vmatprep.subr.msk.mxu1 %vm673_vm1, %v2548_v43 }
 0x26d   : > { %v2552_v44 = vpop.f32.mrf.mxu0  ;;  %v2554_v45 = vpop.f32.mrf.mxu1  ;;  %1882 = vmatpush3.xpose.msk.msra.mxu1 %vm673_vm1, %v2548_v43 }
 0x26e   : > { %1883 = vmatprep.subr.msk.mxu1 %vm673_vm1, %v2554_v45  ;;  %1885 = vmatprep.mubr.msk.f32.mxu1 %vm673_vm1, %v2552_v44 }
 0x271   : > { %1884 = vmatpush3.xpose.msk.msra.mxu1 %vm673_vm1, %v2554_v45 }
 0x273   : > { %v2564_v46 = vpop.f32.mrf.mxu0 }
 0x274   : > { %1888 = vmatprep.subr.mxu1 %v2564_v46  ;;  %1886 = vmatmul.mubr.msk.f32.vlgmr.msra.gmra.mxu1 %vm673_vm1, %v2546_v42 }
 0x275   : > { %v2569_v47 = vpop.f32.mrf.mxu0  ;;  %1889 = vmatpush3.msra.mxu1 %v2564_v46 }
 0x276   : > { %1890 = vmatprep.subr.mxu1 %v2569_v47 }
 0x277   : > { %1891 = vmatpush3.msra.mxu1 %v2569_v47 }
 0x334   : > { %v1887_v48 = vpop.f32.mrf.mxu1 }
 0x335   : > { %v762_v49 = vmul.f32 0.35355338, %v1887_v48 }
 0x336   : > { %v752_v50 = vpop.f32.mrf.mxu1 }
 0x337   : > { %v761_v51 = vmul.f32 0.35355338, %v752_v50  ;;  %v767_v52 = vsel %vm763_vm2, %v762_v49, -inf }
 0x338   : > { %768 = vmax.xlane.f32.xlu1 %v767_v52 }
 0x339   : > { %v764_v53 = vsel %vm763_vm2, %v761_v51, -inf }
 0x33a   : > { %765 = vmax.xlane.f32.xlu0 %v764_v53 }
 0x3c1   : > { %v769_v54 = vpop.xlane.xlu1 %768 }
 0x3c2   : > { %v771_v55 = vsub.f32 %v762_v49, %v769_v54 }
 0x3c3   : > { %v766_v56 = vpop.xlane.xlu0 %765 }
 0x3c4   : > { %v774_v57 = vmul.f32 1.442695, %v771_v55  ;;  %v770_v58 = vsub.f32 %v761_v51, %v766_v56 }
 0x3c6   : > { %2048 = vpow2.f32 %v774_v57  ;;  %v772_v59 = vmul.f32 1.442695, %v770_v58 }
 0x3c8   : > { %2050 = vpow2.f32 %v772_v59 }
 0x3d3   : > { %v2049_v60 = vpop.eup %2048 }
 0x3d4   : > { %v779_v61 = vsel %vm763_vm2, %v2049_v60, 0.0 }
 0x3d5   : > { %v2051_v62 = vpop.eup %2050  ;;  %780 = vadd.xlane.f32.xlu1 %v779_v61 }
 0x3d6   : > { %v776_v63 = vsel %vm763_vm2, %v2051_v62, 0.0 }
 0x3d7   : > { %777 = vadd.xlane.f32.xlu0 %v776_v63 }
 0x3e6   : > { %873 = vrot.lane.b32.xlu1 %v2554_v45, %s2293_s16 }
 0x3ea   : > { %869 = vrot.lane.b32.xlu1 %v2552_v44, %s2293_s16 }
 0x3ed   : > { %875 = vrot.lane.b32.xlu0 %v2548_v43, %s2293_s16 }
 0x3ee   : > { %871 = vrot.lane.b32.xlu1 %v2546_v42, %s2293_s16 }
 0x45e   : > { %v781_v2 = vpop.xlane.xlu1 %780 }
 0x45f   : > { %2052 = vrcp.f32 %v781_v2 }
 0x460   : > { %v778_v3 = vpop.xlane.xlu0 %777 }
 0x461   : > { %2054 = vrcp.f32 %v778_v3 }
 0x462   : > { %v874_v5 = vpop.permute.xlu1 %873 }
 0x464   : > { %v876_v4 = vpop.permute.xlu0 %875 }
 0x465   : > { %1895 = vmatprep.subr.msk.mxu1 %vm673_vm1, %v876_v4 }
 0x466   : > { %v870_v10 = vpop.permute.xlu1 %869 }
 0x46a   : > { %v872_v11 = vpop.permute.xlu1 %871 }
 0x46c   : > { %v2053_v6 = vpop.eup %2052 }
 0x46d   : > { %v785_v9 = vmul.f32 %v2053_v6, %v2049_v60 }
 0x46e   : > { %v2055_v7 = vpop.eup %2054 }
 0x46f   : > { %v784_v8 = vmul.f32 %v2055_v7, %v2051_v62 }
 0x471   : > { %1892 = vmatprep.mubr.msk.f32.mxu1 %vm763_vm2, %v784_v8 }
 0x472   : > { %1893 = vmatmul.mubr.msk.f32.vlgmr.msra.gmra.mxu1 %vm763_vm2, %v785_v9 }
 0x473   : > { %1896 = vmatpush3.xpose.msk.msra.mxu1 %vm673_vm1, %v876_v4  ;;  %1899 = vmatprep.mubr.msk.f32.mxu1 %vm673_vm1, %v870_v10 }
 0x474   : > { %1897 = vmatprep.subr.msk.mxu1 %vm673_vm1, %v874_v5 }
 0x477   : > { %1898 = vmatpush3.xpose.msk.msra.mxu1 %vm673_vm1, %v874_v5 }
 0x47a   : > { %1900 = vmatmul.mubr.msk.f32.vlgmr.msra.gmra.mxu1 %vm673_vm1, %v872_v11 }
 0x532   : > { %v1894_v12 = vpop.f32.mrf.mxu1 }
 0x533   : > { %868 = vst.msk [vmem:[#allocation2 + $0x8] sm:$0xff] %vm673_vm1, %v1894_v12 }
 0x534   : > { %v858_v13 = vpop.f32.mrf.mxu1 }
 0x535   : > { %867 = vst.msk [vmem:[#allocation2] sm:$0xff] %vm673_vm1, %v858_v13 }
 0x53a   : > { %v1901_v14 = vpop.f32.mrf.mxu1 }
 0x53b   : > { %v961_v15 = vmul.f32 0.35355338, %v1901_v14 }
 0x53c   : > { %v951_v16 = vpop.f32.mrf.mxu1 }
 0x53d   : > { %v960_v17 = vmul.f32 0.35355338, %v951_v16  ;;  %v965_v18 = vsel %vm763_vm2, %v961_v15, -inf }
 0x53e   : > { %966 = vmax.xlane.f32.xlu1 %v965_v18 }
 0x53f   : > { %v962_v19 = vsel %vm763_vm2, %v960_v17, -inf }
 0x540   : > { %963 = vmax.xlane.f32.xlu0 %v962_v19 }
 0x54f   : > { %986 = vrot.lane.b32.xlu1 %v2569_v47, %s2293_s16 }
 0x553   : > { %1090 = vrot.lane.b32.xlu1 %v2548_v43, %s2294_s24 }
 0x557   : > { %1088 = vrot.lane.b32.xlu1 %v2554_v45, %s2294_s24 }
 0x55b   : > { %1086 = vrot.lane.b32.xlu1 %v2546_v42, %s2294_s24 }
 0x5c7   : > { %v967_v20 = vpop.xlane.xlu1 %966 }
 0x5c8   : > { %v969_v21 = vsub.f32 %v961_v15, %v967_v20 }
 0x5c9   : > { %v964_v22 = vpop.xlane.xlu0 %963 }
 0x5ca   : > { %v972_v23 = vmul.f32 1.442695, %v969_v21  ;;  %v968_v24 = vsub.f32 %v960_v17, %v964_v22 }
 0x5cb   : > { %v987_v32 = vpop.permute.xlu1 %986 }
 0x5cc   : > { %2056 = vpow2.f32 %v972_v23  ;;  %v970_v25 = vmul.f32 1.442695, %v968_v24 }
 0x5ce   : > { %2058 = vpow2.f32 %v970_v25 }
 0x5cf   : > { %v1091_v34 = vpop.permute.xlu1 %1090 }
 0x5d3   : > { %v1089_v40 = vpop.permute.xlu1 %1088 }
 0x5d7   : > { %v1087_v41 = vpop.permute.xlu1 %1086 }
 0x5d9   : > { %v2057_v26 = vpop.eup %2056 }
 0x5da   : > { %v977_v27 = vsel %vm763_vm2, %v2057_v26, 0.0 }
 0x5db   : > { %v2059_v28 = vpop.eup %2058  ;;  %978 = vadd.xlane.f32.xlu0 %v977_v27 }
 0x5dc   : > { %v974_v29 = vsel %vm763_vm2, %v2059_v28, 0.0 }
 0x5df   : > { %975 = vadd.xlane.f32.xlu0 %v974_v29 }
 0x5f5   : > { %988 = vrot.lane.b32.xlu0 %v2564_v46, %s2293_s16  ;;  %s2676_s16 = scalar_lea.hbm %s2733_s8, %s1791_s22 }
 0x5f9   : > { %1084 = vrot.lane.b32.xlu0 %v2552_v44, %s2294_s24 }
 0x664   : > { %v979_v30 = vpop.xlane.xlu0 %978 }
 0x665   : > { %2060 = vrcp.f32 %v979_v30 }
 0x668   : > { %v976_v31 = vpop.xlane.xlu0 %975 }
 0x669   : > { %2062 = vrcp.f32 %v976_v31 }
 0x66c   : > { %v989_v33 = vpop.permute.xlu0 %988 }
 0x66d   : > { %1902 = vmatprep.subr.mxu0 %v989_v33 }
 0x66e   : > { %1903 = vmatpush3.msra.mxu0 %v989_v33 }
 0x66f   : > { %1904 = vmatprep.subr.mxu0 %v987_v32 }
 0x670   : > { %1905 = vmatpush3.msra.mxu0 %v987_v32  ;;  %v1085_v39 = vpop.permute.xlu0 %1084 }
 0x671   : > { %1909 = vmatprep.subr.msk.mxu0 %vm673_vm1, %v1091_v34 }
 0x672   : > { %v2061_v35 = vpop.eup %2060 }
 0x673   : > { %v983_v38 = vmul.f32 %v2061_v35, %v2057_v26 }
 0x676   : > { %v2063_v36 = vpop.eup %2062 }
 0x677   : > { %v982_v37 = vmul.f32 %v2063_v36, %v2059_v28 }
 0x679   : > { %1906 = vmatprep.mubr.msk.f32.mxu0 %vm763_vm2, %v982_v37 }
 0x67a   : > { %1907 = vmatmul.mubr.msk.f32.vlgmr.msra.gmra.mxu0 %vm763_vm2, %v983_v38 }
 0x67b   : > { %1910 = vmatpush3.xpose.msk.msra.mxu0 %vm673_vm1, %v1091_v34  ;;  %1913 = vmatprep.mubr.msk.f32.mxu0 %vm673_vm1, %v1085_v39 }
 0x67c   : > { %1911 = vmatprep.subr.msk.mxu0 %vm673_vm1, %v1089_v40 }
 0x67f   : > { %1912 = vmatpush3.xpose.msk.msra.mxu0 %vm673_vm1, %v1089_v40 }
 0x682   : > { %1914 = vmatmul.mubr.msk.f32.vlgmr.msra.gmra.mxu0 %vm673_vm1, %v1087_v41  ;;  %v1514_v41 = vld [vmem:[#allocation11 + $0x10] sm:$0xff] }
 0x73a   : > { %v2620_v48 = vpop.f32.mrf.mxu0 }
 0x73c   : > { %v2622_v49 = vpop.f32.mrf.mxu0 }
 0x742   : > { %v1915_v50 = vpop.f32.mrf.mxu0 }
 0x743   : > { %v1176_v51 = vmul.f32 0.35355338, %v1915_v50 }
 0x744   : > { %v1166_v52 = vpop.f32.mrf.mxu0 }
 0x745   : > { %v1175_v53 = vmul.f32 0.35355338, %v1166_v52  ;;  %v1180_v54 = vsel %vm763_vm2, %v1176_v51, -inf }
 0x746   : > { %1181 = vmax.xlane.f32.xlu1 %v1180_v54 }
 0x747   : > { %v1177_v55 = vsel %vm763_vm2, %v1175_v53, -inf }
 0x748   : > { %1178 = vmax.xlane.f32.xlu0 %v1177_v55 }
 0x757   : > { %1199 = vrot.lane.b32.xlu1 %v2569_v47, %s2294_s24 }
 0x75b   : > { %1303 = vrot.lane.b32.xlu1 %v2548_v43, %s2295_s25 }
 0x75f   : > { %1301 = vrot.lane.b32.xlu1 %v2554_v45, %s2295_s25 }
 0x763   : > { %1299 = vrot.lane.b32.xlu1 %v2546_v42, %s2295_s25 }
 0x7cf   : > { %v1182_v56 = vpop.xlane.xlu1 %1181 }
 0x7d0   : > { %v1184_v57 = vsub.f32 %v1176_v51, %v1182_v56  ;;  %v1782_v56 = vld [vmem:[%s2732_s7] ss:$0 sm:$0xff] }
 0x7d1   : > { %v1179_v58 = vpop.xlane.xlu0 %1178 }
 0x7d2   : > { %v1187_v59 = vmul.f32 1.442695, %v1184_v57  ;;  %v1183_v60 = vsub.f32 %v1175_v53, %v1179_v58 }
 0x7d3   : > { %v1200_v3 = vpop.permute.xlu1 %1199 }
 0x7d4   : > { %2064 = vpow2.f32 %v1187_v59  ;;  %v1185_v61 = vmul.f32 1.442695, %v1183_v60 }
 0x7d6   : > { %2066 = vpow2.f32 %v1185_v61 }
 0x7d7   : > { %v1304_v5 = vpop.permute.xlu1 %1303 }
 0x7db   : > { %v1302_v10 = vpop.permute.xlu1 %1301 }
 0x7df   : > { %v1300_v11 = vpop.permute.xlu1 %1299 }
 0x7e1   : > { %v2065_v62 = vpop.eup %2064 }
 0x7e2   : > { %v1192_v63 = vsel %vm763_vm2, %v2065_v62, 0.0 }
 0x7e3   : > { %v2067_v2 = vpop.eup %2066  ;;  %1193 = vadd.xlane.f32.xlu0 %v1192_v63 }
 0x7e4   : > { %v1189_v43 = vsel %vm763_vm2, %v2067_v2, 0.0 }
 0x7e7   : > { %1190 = vadd.xlane.f32.xlu0 %v1189_v43 }
 0x7fd   : > { %1201 = vrot.lane.b32.xlu0 %v2564_v46, %s2294_s24  ;;  %s2299_s24 = smov [#allocation12]  }
 0x801   : > { %1297 = vrot.lane.b32.xlu0 %v2552_v44, %s2295_s25 }
 0x86c   : > { %v1194_v42 = vpop.xlane.xlu0 %1193 }
 0x86d   : > { %2068 = vrcp.f32 %v1194_v42 }
 0x870   : > { %v1191_v45 = vpop.xlane.xlu0 %1190 }
 0x871   : > { %2070 = vrcp.f32 %v1191_v45 }
 0x874   : > { %v1202_v4 = vpop.permute.xlu0 %1201 }
 0x875   : > { %1916 = vmatprep.subr.mxu1 %v1202_v4 }
 0x876   : > { %1917 = vmatpush3.msra.mxu1 %v1202_v4 }
 0x877   : > { %1918 = vmatprep.subr.mxu1 %v1200_v3 }
 0x878   : > { %1919 = vmatpush3.msra.mxu1 %v1200_v3  ;;  %v1298_v44 = vpop.permute.xlu0 %1297 }
 0x879   : > { %1923 = vmatprep.subr.msk.mxu1 %vm673_vm1, %v1304_v5 }
 0x87a   : > { %v2069_v6 = vpop.eup %2068 }
 0x87b   : > { %v1198_v9 = vmul.f32 %v2069_v6, %v2065_v62 }
 0x87e   : > { %v2071_v7 = vpop.eup %2070 }
 0x87f   : > { %v1197_v8 = vmul.f32 %v2071_v7, %v2067_v2 }
 0x881   : > { %1920 = vmatprep.mubr.msk.f32.mxu1 %vm763_vm2, %v1197_v8 }
 0x882   : > { %1921 = vmatmul.mubr.msk.f32.vlgmr.msra.gmra.mxu1 %vm763_vm2, %v1198_v9 }
 0x883   : > { %1924 = vmatpush3.xpose.msk.msra.mxu1 %vm673_vm1, %v1304_v5  ;;  %1927 = vmatprep.mubr.msk.f32.mxu1 %vm673_vm1, %v1298_v44 }
 0x884   : > { %1925 = vmatprep.subr.msk.mxu1 %vm673_vm1, %v1302_v10 }
 0x887   : > { %1926 = vmatpush3.xpose.msk.msra.mxu1 %vm673_vm1, %v1302_v10 }
 0x88a   : > { %1928 = vmatmul.mubr.msk.f32.vlgmr.msra.gmra.mxu1 %vm673_vm1, %v1300_v11 }
 0x942   : > { %v1922_v12 = vpop.f32.mrf.mxu1 }
 0x944   : > { %v1277_v13 = vpop.f32.mrf.mxu1 }
 0x94a   : > { %v1929_v14 = vpop.f32.mrf.mxu1 }
 0x94b   : > { %v1389_v15 = vmul.f32 0.35355338, %v1929_v14 }
 0x94c   : > { %v1379_v16 = vpop.f32.mrf.mxu1 }
 0x94d   : > { %v1388_v17 = vmul.f32 0.35355338, %v1379_v16  ;;  %v1393_v18 = vsel %vm763_vm2, %v1389_v15, -inf }
 0x94e   : > { %1394 = vmax.xlane.f32.xlu1 %v1393_v18 }
 0x94f   : > { %v1390_v19 = vsel %vm763_vm2, %v1388_v17, -inf }
 0x950   : > { %1391 = vmax.xlane.f32.xlu0 %v1390_v19 }
 0x95f   : > { %1412 = vrot.lane.b32.xlu1 %v2569_v47, %s2295_s25 }
 0x963   : > { %1075 = vrot.lane.b32.xlu1 %v2622_v49, %s2296_s17  ;;  %v1512_v49 = vld [vmem:[#allocation11] sm:$0xff] }
 0x967   : > { %1077 = vrot.lane.b32.xlu1 %v2620_v48, %s2296_s17  ;;  %v1513_v48 = vld [vmem:[#allocation11 + $0x8] sm:$0xff] }
 0x96b   : > { %1290 = vrot.lane.b32.xlu1 %v1922_v12, %s2297_s18 }
 0x9d7   : > { %v1395_v20 = vpop.xlane.xlu1 %1394 }
 0x9d8   : > { %v1397_v21 = vsub.f32 %v1389_v15, %v1395_v20 }
 0x9d9   : > { %v1392_v22 = vpop.xlane.xlu0 %1391 }
 0x9da   : > { %v1400_v23 = vmul.f32 1.442695, %v1397_v21  ;;  %v1396_v24 = vsub.f32 %v1388_v17, %v1392_v22 }
 0x9db   : > { %v1413_v25 = vpop.permute.xlu1 %1412 }
 0x9dc   : > { %2072 = vpow2.f32 %v1400_v23  ;;  %v1398_v26 = vmul.f32 1.442695, %v1396_v24 }
 0x9de   : > { %2074 = vpow2.f32 %v1398_v26 }
 0x9df   : > { %v1076_v47 = vpop.permute.xlu1 %1075 }
 0x9e0   : > { %1082 = vst.msk [vmem:[#allocation2] sm:$0xff] %vm1081_vm3, %v1076_v47 }
 0x9e3   : > { %v1078_v27 = vpop.permute.xlu1 %1077 }
 0x9e4   : > { %1083 = vst.msk [vmem:[#allocation2 + $0x8] sm:$0xff] %vm1081_vm3, %v1078_v27 }
 0x9e7   : > { %v1291_v28 = vpop.permute.xlu1 %1290 }
 0x9e8   : > { %1296 = vst.msk [vmem:[#allocation2 + $0x8] sm:$0xff] %vm1294_vm4, %v1291_v28 }
 0x9e9   : > { %v2073_v29 = vpop.eup %2072 }
 0x9ea   : > { %v1405_v30 = vsel %vm763_vm2, %v2073_v29, 0.0 }
 0x9eb   : > { %v2075_v31 = vpop.eup %2074  ;;  %1406 = vadd.xlane.f32.xlu0 %v1405_v30 }
 0x9ec   : > { %v1402_v32 = vsel %vm763_vm2, %v2075_v31, 0.0 }
 0x9ef   : > { %1403 = vadd.xlane.f32.xlu0 %v1402_v32 }
 0xa05   : > { %1414 = vrot.lane.b32.xlu0 %v2564_v46, %s2295_s25  ;;  %v1515_v46 = vld [vmem:[#allocation11 + $0x18] sm:$0xff]  ;;  %s2216_s25 = sshll.u32 %s2299_s24, 4  ;;  %s2217_s25 = int_to_ptr.vmem [resolvable:$false] %s2216_s25 }
 0xa06   : > { %p2219_p13 = scmp.lt.s32.totalorder %s2680_s13, %s2217_s25 }
 0xa09   : > { %1288 = vrot.lane.b32.xlu0 %v1277_v13, %s2297_s18  ;;  %s2218_s18 = scalar_lea.vmem %s2217_s25, 512 }
 0xa0a   : > { %p2220_p0 = scmp.lt.s32.totalorder %s2218_s18, %s2212_s4 }
 0xa0c   : > { %p2221_p11 = por %p2220_p0, %p2219_p13 }
 0xa0e   : > { %p2222_p5 = pnand %p2221_p11, %p2215_p1 }
 0xa74   : > { %v1407_v33 = vpop.xlane.xlu0 %1406 }
 0xa75   : > { %2076 = vrcp.f32 %v1407_v33 }
 0xa78   : > { %v1404_v34 = vpop.xlane.xlu0 %1403 }
 0xa79   : > { %2078 = vrcp.f32 %v1404_v34 }
 0xa7c   : > { %v1415_v35 = vpop.permute.xlu0 %1414 }
 0xa7d   : > { %1930 = vmatprep.subr.mxu0 %v1415_v35 }
 0xa7e   : > { %1931 = vmatpush3.msra.mxu0 %v1415_v35 }
 0xa7f   : > { %1932 = vmatprep.subr.mxu0 %v1413_v25 }
 0xa80   : > { %1933 = vmatpush3.msra.mxu0 %v1413_v25  ;;  %v1289_v36 = vpop.permute.xlu0 %1288 }
 0xa81   : > { %1295 = vst.msk [vmem:[#allocation2] sm:$0xff] %vm1294_vm4, %v1289_v36  ;;  %1937 = vmatprep.subr.mxu0 %v1515_v46 }
 0xa82   : > { %v2077_v37 = vpop.eup %2076 }
 0xa83   : > { %v1411_v40 = vmul.f32 %v2077_v37, %v2073_v29 }
 0xa86   : > { %v2079_v38 = vpop.eup %2078 }
 0xa87   : > { %v1410_v39 = vmul.f32 %v2079_v38, %v2075_v31 }
 0xa89   : > { %1934 = vmatprep.mubr.msk.f32.mxu0 %vm763_vm2, %v1410_v39 }
 0xa8a   : > { %1935 = vmatmul.mubr.msk.f32.vlgmr.msra.gmra.mxu0 %vm763_vm2, %v1411_v40 }
 0xa8b   : > { %1938 = vmatpush3.msra.mxu0 %v1515_v46 }
 0xa8c   : > { %1939 = vmatprep.subr.mxu0 %v1514_v41 }
 0xa8d   : > { %1940 = vmatpush3.msra.mxu0 %v1514_v41 }
 0xa8e   : > { %1941 = vmatprep.subr.mxu0 %v1513_v48 }
 0xa8f   : > { %1942 = vmatpush3.msra.mxu0 %v1513_v48 }
 0xa90   : > { %1943 = vmatprep.subr.mxu0 %v1512_v49 }
 0xa91   : > { %1944 = vmatpush3.msra.mxu0 %v1512_v49 }
 0xb4a   : > { %v1936_v50 = vpop.f32.mrf.mxu0 }
 0xb4b   : > { %1503 = vrot.lane.b32.xlu1 %v1936_v50, %s2298_s23 }
 0xb4c   : > { %v1490_v51 = vpop.f32.mrf.mxu0 }
 0xb4d   : > { %1501 = vrot.lane.b32.xlu0 %v1490_v51, %s2298_s23 }
 0xbbd   : > { %v1504_v52 = vpop.permute.xlu1 %1503 }
 0xbbe   : > { %1509 = vst.msk [vmem:[#allocation2 + $0x8] sm:$0xff] %vm1507_vm5, %v1504_v52 }
 0xbbf   : > { %v1502_v53 = vpop.permute.xlu0 %1501 }
 0xbc0   : > { %1508 = vst.msk [vmem:[#allocation2] sm:$0xff] %vm1507_vm5, %v1502_v53 }
 0xbc5   : > { %v1511_v55 = vld [vmem:[#allocation2 + $0x8] sm:$0xff] }
 0xbc7   : > { %v1510_v54 = vld [vmem:[#allocation2] sm:$0xff] }
 0xbc8   : > { %1945 = vmatprep.mubr.msk.f32.mxu0 %vm386_vm0, %v1510_v54 }
 0xbc9   : > { %1946 = vmatmul.mubr.msk.f32.vlgmr.msra.gmra.mxu0 %vm386_vm0, %v1511_v55 }
 0xc89   : > { %v1947_v57 = vpop.f32.mrf.mxu0 }
 0xc8a   : > { %v1601_v58 = vadd.f32 %v1947_v57, %v1782_v56 }
 0xc8b   : > { %v1595_v59 = vpop.f32.mrf.mxu0 }
 0xc8c   : > { %v1605_v60 = vadd.f32 %v1601_v58, %v2524_v1  ;;  %v1596_v61 = vadd.f32 %v1782_v56, %v1595_v59 }
 0xc8e   : > { %1607 = vst.msk [vmem:[%s381_s11 + $0x8] sm:$0xff] %vm386_vm0, %v1605_v60  ;;  %v1604_v62 = vadd.f32 %v1596_v61, %v2522_v0 }
 0xc90   : > { %1606 = vst.msk [vmem:[%s381_s11] sm:$0xff] %vm386_vm0, %v1604_v62 }
 0xc91   : > { %2225 = shalt.err (!%p2222_p5)
}
 0xc92   : > { %s2226_s23 = scalar_lea.hbm %s2676_s16, 256  ;;  %s2230_s22 = scalar_lea.hbm %s2733_s8, 512 }
 0xc93   : > { %p2227_p6 = scmp.ne.s32.totalorder %s2676_s16, %s2226_s23  ;;  %p2231_p9 = scmp.lt.s32.totalorder %s2676_s16, %s2733_s8 }
 0xc94   : > { %p2232_p2 = scmp.lt.s32.totalorder %s2230_s22, %s2226_s23 }
 0xc95   : > { %p2228_p4 = pnand %p2227_p6, %p2758_p12 }
 0xc96   : > { %p2233_p3 = por %p2232_p2, %p2231_p9 }
 0xc97   : > { %p2229_p8 = pneg %p2228_p4 }
 0xc99   : > { %p2234_p10 = pnand %p2233_p3, %p2229_p8 }
 0xc9b   : > { %2237 = shalt.err (!%p2234_p10)
}
 0xc9c   : > { %s2300_s10 = smov 128  }
 0xc9d   : > { %1966 = dma.vmem_to_hbm [thread:$0]  (%p2758_p12), %s2680_s13, 256, %s2676_s16, %s1609_s9, %s2300_s10, %s2300_s10, %s2296_s17  }
 0xc9e PF: > { %s1637_s4 = sand.u32 1, %s2272_s27   ;;  %p2759_p7 = scmp.ne.s32.totalorder %s2743_s12, 0 }
 0xc9f   : > { %p2760_p1 = scmp.ge.s32.totalorder %s2284_s30, 2  ;;  %s1638_s24 = scalar_lea.sflag [#allocation5], %s1637_s4 }
 0xca1   : > { %p1986_p13 = pnand %p2760_p1, %p2759_p7 }
 0xca3   : > { %p1987_p0 = pneg %p1986_p13 }
 0xca5   : > { %2267 = dma.done.wait (%p1987_p0), %s1638_s24, 256  }
 0xca6   : > { %2269 = vsyncadd (%p1987_p0), %s1638_s24, 4294967040  ;;  %p23_p11 = scmp.ge.s32.totalorder %s2446_s26, 4   ;;  %s2761_s27 = smov %s2276_s28 }
 0xca7   : > { %s2762_s28 = smov %s2280_s29  ;;  %s2763_s29 = smov %s2462_s15 }
 0xca8   : > { %s2764_s30 = smov %s2446_s26  ;;  %25 = sbr.rel (!%p23_p11) target bundleno = 10 (0xa), region = 113 }
 0xcad   :  { %1643 = vsyncpa [#allocation4], 1 }
 0xcae   :  { %1645 = vsyncpa [#allocation4 + $0x1], 1 }
 0xcaf   :  { %1646 = vsyncpa [#allocation7], 1 }
 0xcb0   :  { %1647 = vsyncpa [#allocation10], 1 }
 0xcb1   :  { %1648 = vsyncpa [#allocation5], 1 }
 0xcb2   :  { %1650 = vsyncpa [#allocation5 + $0x1], 1 }

</bundles_post_ra>
